<compile_context>
chip_gen: v7x
topology: tpu7x:2x2x1
jax: 0.10.0
libtpu: 0.0.40
codegen_flags: <defaults>
</compile_context>

<pallas_src>
import functools

import jax
import jax.numpy as jnp
from jax.experimental import pallas as pl
from jax.experimental.pallas import tpu as pltpu


def _conv_bn_lrelu_kernel(x_ref, w_ref, b_ref, o_ref, xp_ref, *,
                          kh_size, kw_size, stride, pad, h, w, oh, ow,
                          negative_slope):
    # x_ref : (Cin, H, W)        one batch element, NCHW interior (unpadded)
    # w_ref : (Cout, KH*KW*Cin)  BN-folded weights, K ordered (kh, kw, cin)
    # b_ref : (Cout, 1)          BN-folded bias (f32)
    # o_ref : (Cout, OH*OW)      output slab (spatial on lanes)
    # xp_ref: (Cin, HP, WP)      VMEM scratch holding the zero-padded image
    cin = x_ref.shape[0]

    # In-kernel zero padding: zero the (tiny) padded scratch, copy the
    # interior.  No padded copy of x is ever materialized in HBM.
    xp_ref[...] = jnp.zeros_like(xp_ref)
    xp_ref[:, pad:pad + h, pad:pad + w] = x_ref[...]

    # Build the patch matrix (KH*KW*Cin, OH*OW): one strided window per tap,
    # channels stacked along sublanes, spatial flattened onto lanes.
    windows = []
    for kh in range(kh_size):
        for kw in range(kw_size):
            if stride == 1:
                win = xp_ref[:, pl.ds(kh, oh), pl.ds(kw, ow)]
            else:
                win = xp_ref[:, pl.ds(kh, oh, stride=stride),
                             pl.ds(kw, ow, stride=stride)]
            windows.append(win.reshape(cin, oh * ow))
    patches = jnp.concatenate(windows, axis=0)            # (K, OH*OW)

    # Single MXU matmul: (Cout, K) @ (K, OH*OW) with f32 accumulation.
    acc = jnp.dot(w_ref[...], patches, preferred_element_type=jnp.float32)

    y = acc + b_ref[...]                                   # (Cout,1) broadcast
    y = jnp.where(y >= 0, y, negative_slope * y)           # LeakyReLU on VPU
    o_ref[...] = y.astype(o_ref.dtype)                     # lane-dense store


def conv_bn_lrelu(x, weight, bias, gamma, beta, running_mean, running_var, *,
                  stride=1, padding=1, eps=1e-5, negative_slope=0.1):
    """x: (N, Cin, H, W) NCHW.  weight: (Cout, Cin, KH, KW).  Returns NCHW."""
    N, Cin, H, W = x.shape
    Cout, _, KH, KW = weight.shape
    OH = (H + 2 * padding - KH) // stride + 1
    OW = (W + 2 * padding - KW) // stride + 1
    HP, WP = H + 2 * padding, W + 2 * padding
    K = KH * KW * Cin

    # Fold eval-mode BatchNorm into the conv weights/bias (tiny, once).
    # TODO(synk): training-mode BatchNorm (batch statistics) is not implemented;
    # this uses running statistics as in PyTorch .eval().
    scale = gamma / jnp.sqrt(running_var + eps)                      # (Cout,)
    w_fold = weight * scale[:, None, None, None]                     # (Cout,Cin,KH,KW)
    b_fold = (bias - running_mean) * scale + beta                    # (Cout,)

    # (Cout, KH*KW*Cin) with K ordered (kh, kw, cin) to match the in-kernel
    # patch construction; kept in x.dtype for the native MXU path.
    w2d = jnp.transpose(w_fold, (0, 2, 3, 1)).reshape(Cout, K).astype(x.dtype)
    b2d = b_fold.reshape(Cout, 1).astype(jnp.float32)

    kernel = functools.partial(
        _conv_bn_lrelu_kernel,
        kh_size=KH, kw_size=KW, stride=stride, pad=padding,
        h=H, w=W, oh=OH, ow=OW, negative_slope=negative_slope)

    out = pl.pallas_call(
        kernel,
        out_shape=jax.ShapeDtypeStruct((N, Cout, OH * OW), x.dtype),
        grid_spec=pltpu.PrefetchScalarGridSpec(
            num_scalar_prefetch=0,
            grid=(N,),
            in_specs=[
                pl.BlockSpec((None, Cin, H, W), lambda n: (n, 0, 0, 0)),
                pl.BlockSpec((Cout, K), lambda n: (0, 0)),
                pl.BlockSpec((Cout, 1), lambda n: (0, 0)),
            ],
            out_specs=pl.BlockSpec((None, Cout, OH * OW), lambda n: (n, 0, 0)),
            scratch_shapes=[pltpu.VMEM((Cin, HP, WP), x.dtype)],
        ),
        compiler_params=pltpu.CompilerParams(
            dimension_semantics=("parallel",),   # batch split across TCs
        ),
    )(x, w2d, b2d)

    # (N, Cout, OH*OW) is already NCHW-contiguous: free reshape, no transpose.
    return out.reshape(N, Cout, OH, OW)


def _reference(x, weight, bias, gamma, beta, mean, var, *,
               stride, padding, eps, negative_slope):
    y = jax.lax.conv_general_dilated(
        x, weight,
        window_strides=(stride, stride),
        padding=((padding, padding), (padding, padding)),
        dimension_numbers=("NCHW", "OIHW", "NCHW"),
        precision=jax.lax.Precision.HIGHEST)
    y = y + bias[None, :, None, None]
    y = (y - mean[None, :, None, None]) / jnp.sqrt(var[None, :, None, None] + eps)
    y = y * gamma[None, :, None, None] + beta[None, :, None, None]
    return jnp.where(y >= 0, y, negative_slope * y)


if __name__ == "__main__":
    key = jax.random.PRNGKey(0)
    ks = jax.random.split(key, 7)

    N, Cin, Cout, H, W = 2, 4, 8, 16, 16
    KH = KW = 3
    stride, padding = 1, 1

    x = jax.random.normal(ks[0], (N, Cin, H, W), dtype=jnp.float32)
    weight = 0.1 * jax.random.normal(ks[1], (Cout, Cin, KH, KW), dtype=jnp.float32)
    bias = 0.1 * jax.random.normal(ks[2], (Cout,), dtype=jnp.float32)
    gamma = 1.0 + 0.1 * jax.random.normal(ks[3], (Cout,), dtype=jnp.float32)
    beta = 0.1 * jax.random.normal(ks[4], (Cout,), dtype=jnp.float32)
    running_mean = 0.1 * jax.random.normal(ks[5], (Cout,), dtype=jnp.float32)
    running_var = 1.0 + 0.1 * jax.random.uniform(ks[6], (Cout,), dtype=jnp.float32)

    out = conv_bn_lrelu(x, weight, bias, gamma, beta, running_mean, running_var,
                        stride=stride, padding=padding, eps=1e-5,
                        negative_slope=0.1)
    out = jax.block_until_ready(out)

    ref = _reference(x, weight, bias, gamma, beta, running_mean, running_var,
                     stride=stride, padding=padding, eps=1e-5,
                     negative_slope=0.1)

    assert out.shape == (N, Cout, H, W), out.shape
    assert out.dtype == x.dtype, out.dtype
    assert jnp.allclose(out, ref, atol=1e-4, rtol=1e-4), \
        f"mismatch vs reference, max abs err = {jnp.max(jnp.abs(out - ref))}"

    print("KERNEL_OK")
</pallas_src>

<mosaic_0001>
module attributes {stable_mosaic.version = 11 : i64} {
  func.func @_conv_bn_lrelu_kernel(%arg0: i32, %arg1: memref<1x4x16x16xf32, #tpu.memory_space<vmem>>, %arg2: memref<8x36xf32, #tpu.memory_space<vmem>>, %arg3: memref<8x1xf32, #tpu.memory_space<vmem>>, %arg4: memref<1x8x256xf32, #tpu.memory_space<vmem>>, %arg5: memref<4x18x18xf32, #tpu.memory_space<vmem>>) attributes {dimension_semantics = [#tpu.dimension_semantics<parallel>], iteration_bounds = array<i64: 2>, scalar_prefetch = 0 : i64, scratch_operands = 1 : i64, tpu.core_type = #tpu.core_type<tc>, window_params = [{transform_indices = @transform_0, window_bounds = array<i64: 1, 4, 16, 16>}, {pipeline_mode = #tpu.pipeline_mode<synchronous>, transform_indices = @transform_1, window_bounds = array<i64: 8, 36>}, {pipeline_mode = #tpu.pipeline_mode<synchronous>, transform_indices = @transform_2, window_bounds = array<i64: 8, 1>}, {transform_indices = @transform_3, window_bounds = array<i64: 1, 8, 256>}]} {
    %cst = arith.constant 0.000000e+00 : f32
    %0 = vector.broadcast %cst : f32 to vector<4x18x18xf32>
    %c0 = arith.constant 0 : index
    %c0_0 = arith.constant 0 : index
    %c0_1 = arith.constant 0 : index
    %1 = vector.load %arg5[%c0, %c0_0, %c0_1] : memref<4x18x18xf32, #tpu.memory_space<vmem>>, vector<4x18x18xf32>
    tpu.vector_store %arg5[%c0, %c0_0, %c0_1], %0 {strides = array<i32>} : memref<4x18x18xf32, #tpu.memory_space<vmem>>, vector<4x18x18xf32>,
    %c0_2 = arith.constant 0 : index
    %c0_3 = arith.constant 0 : index
    %c0_4 = arith.constant 0 : index
    %c0_5 = arith.constant 0 : index
    %2 = vector.load %arg1[%c0_2, %c0_3, %c0_4, %c0_5] : memref<1x4x16x16xf32, #tpu.memory_space<vmem>>, vector<1x4x16x16xf32>
    %3 = vector.shape_cast %2 : vector<1x4x16x16xf32> to vector<4x16x16xf32>
    %c0_6 = arith.constant 0 : index
    %c1 = arith.constant 1 : index
    %c1_7 = arith.constant 1 : index
    %4 = vector.load %arg5[%c0_6, %c1, %c1_7] : memref<4x18x18xf32, #tpu.memory_space<vmem>>, vector<4x16x16xf32>
    tpu.vector_store %arg5[%c0_6, %c1, %c1_7], %3 {strides = array<i32>} : memref<4x18x18xf32, #tpu.memory_space<vmem>>, vector<4x16x16xf32>,
    %c0_8 = arith.constant 0 : index
    %c0_9 = arith.constant 0 : index
    %c0_10 = arith.constant 0 : index
    %5 = vector.load %arg5[%c0_8, %c0_9, %c0_10] : memref<4x18x18xf32, #tpu.memory_space<vmem>>, vector<4x16x16xf32>
    %6 = vector.shape_cast %5 : vector<4x16x16xf32> to vector<4x256xf32>
    %c0_11 = arith.constant 0 : index
    %c0_12 = arith.constant 0 : index
    %c1_13 = arith.constant 1 : index
    %7 = vector.load %arg5[%c0_11, %c0_12, %c1_13] : memref<4x18x18xf32, #tpu.memory_space<vmem>>, vector<4x16x16xf32>
    %8 = vector.shape_cast %7 : vector<4x16x16xf32> to vector<4x256xf32>
    %c0_14 = arith.constant 0 : index
    %c0_15 = arith.constant 0 : index
    %c2 = arith.constant 2 : index
    %9 = vector.load %arg5[%c0_14, %c0_15, %c2] : memref<4x18x18xf32, #tpu.memory_space<vmem>>, vector<4x16x16xf32>
    %10 = vector.shape_cast %9 : vector<4x16x16xf32> to vector<4x256xf32>
    %c0_16 = arith.constant 0 : index
    %c1_17 = arith.constant 1 : index
    %c0_18 = arith.constant 0 : index
    %11 = vector.load %arg5[%c0_16, %c1_17, %c0_18] : memref<4x18x18xf32, #tpu.memory_space<vmem>>, vector<4x16x16xf32>
    %12 = vector.shape_cast %11 : vector<4x16x16xf32> to vector<4x256xf32>
    %c0_19 = arith.constant 0 : index
    %c1_20 = arith.constant 1 : index
    %c1_21 = arith.constant 1 : index
    %13 = vector.load %arg5[%c0_19, %c1_20, %c1_21] : memref<4x18x18xf32, #tpu.memory_space<vmem>>, vector<4x16x16xf32>
    %14 = vector.shape_cast %13 : vector<4x16x16xf32> to vector<4x256xf32>
    %c0_22 = arith.constant 0 : index
    %c1_23 = arith.constant 1 : index
    %c2_24 = arith.constant 2 : index
    %15 = vector.load %arg5[%c0_22, %c1_23, %c2_24] : memref<4x18x18xf32, #tpu.memory_space<vmem>>, vector<4x16x16xf32>
    %16 = vector.shape_cast %15 : vector<4x16x16xf32> to vector<4x256xf32>
    %c0_25 = arith.constant 0 : index
    %c2_26 = arith.constant 2 : index
    %c0_27 = arith.constant 0 : index
    %17 = vector.load %arg5[%c0_25, %c2_26, %c0_27] : memref<4x18x18xf32, #tpu.memory_space<vmem>>, vector<4x16x16xf32>
    %18 = vector.shape_cast %17 : vector<4x16x16xf32> to vector<4x256xf32>
    %c0_28 = arith.constant 0 : index
    %c2_29 = arith.constant 2 : index
    %c1_30 = arith.constant 1 : index
    %19 = vector.load %arg5[%c0_28, %c2_29, %c1_30] : memref<4x18x18xf32, #tpu.memory_space<vmem>>, vector<4x16x16xf32>
    %20 = vector.shape_cast %19 : vector<4x16x16xf32> to vector<4x256xf32>
    %c0_31 = arith.constant 0 : index
    %c2_32 = arith.constant 2 : index
    %c2_33 = arith.constant 2 : index
    %21 = vector.load %arg5[%c0_31, %c2_32, %c2_33] : memref<4x18x18xf32, #tpu.memory_space<vmem>>, vector<4x16x16xf32>
    %22 = vector.shape_cast %21 : vector<4x16x16xf32> to vector<4x256xf32>
    %23 = tpu.concatenate %6, %8, %10, %12, %14, %16, %18, %20, %22 in 0 : vector<4x256xf32>, vector<4x256xf32>, vector<4x256xf32>, vector<4x256xf32>, vector<4x256xf32>, vector<4x256xf32>, vector<4x256xf32>, vector<4x256xf32>, vector<4x256xf32> -> vector<36x256xf32>
    %c0_34 = arith.constant 0 : index
    %c0_35 = arith.constant 0 : index
    %24 = vector.load %arg2[%c0_34, %c0_35] : memref<8x36xf32, #tpu.memory_space<vmem>>, vector<8x36xf32>
    %cst_36 = arith.constant dense<0.000000e+00> : vector<8x256xf32>
    %25 = tpu.matmul %24, %23, %cst_36 {dimension_numbers = #tpu.dot_dimension_numbers<[1], [0], [0], [1], [0, 0, 1, 1], [], []>} : vector<8x36xf32>, vector<36x256xf32>, vector<8x256xf32> -> vector<8x256xf32>
    %c0_37 = arith.constant 0 : index
    %c0_38 = arith.constant 0 : index
    %26 = vector.load %arg3[%c0_37, %c0_38] : memref<8x1xf32, #tpu.memory_space<vmem>>, vector<8x1xf32>
    %27 = vector.broadcast %26 : vector<8x1xf32> to vector<8x256xf32>
    %28 = arith.addf %25, %27 : vector<8x256xf32>
    %cst_39 = arith.constant 0.000000e+00 : f32
    %29 = vector.broadcast %cst_39 : f32 to vector<8x256xf32>
    %30 = arith.cmpf oge, %28, %29 : vector<8x256xf32>
    %cst_40 = arith.constant 1.000000e-01 : f32
    %31 = vector.broadcast %cst_40 : f32 to vector<8x256xf32>
    %32 = arith.mulf %31, %28 : vector<8x256xf32>
    %33 = arith.select %30, %28, %32 : vector<8x256xi1>, vector<8x256xf32>
    %c0_41 = arith.constant 0 : index
    %c0_42 = arith.constant 0 : index
    %c0_43 = arith.constant 0 : index
    %34 = vector.load %arg4[%c0_41, %c0_42, %c0_43] : memref<1x8x256xf32, #tpu.memory_space<vmem>>, vector<1x8x256xf32>
    %35 = vector.shape_cast %34 : vector<1x8x256xf32> to vector<8x256xf32>
    %36 = vector.shape_cast %33 : vector<8x256xf32> to vector<1x8x256xf32>
    tpu.vector_store %arg4[%c0_41, %c0_42, %c0_43], %36 {strides = array<i32>} : memref<1x8x256xf32, #tpu.memory_space<vmem>>, vector<1x8x256xf32>,
    return
  }
  func.func @transform_0(%arg0: i32) -> (i32, i32, i32, i32) {
    %c0_i32 = arith.constant 0 : i32
    %c0_i32_0 = arith.constant 0 : i32
    %c0_i32_1 = arith.constant 0 : i32
    %c0_i32_2 = arith.constant 0 : i32
    return %arg0, %c0_i32, %c0_i32_0, %c0_i32_1 : i32, i32, i32, i32
  }
  func.func @transform_1(%arg0: i32) -> (i32, i32) {
    %c0_i32 = arith.constant 0 : i32
    %c0_i32_0 = arith.constant 0 : i32
    %c0_i32_1 = arith.constant 0 : i32
    return %c0_i32, %c0_i32_0 : i32, i32
  }
  func.func @transform_2(%arg0: i32) -> (i32, i32) {
    %c0_i32 = arith.constant 0 : i32
    %c0_i32_0 = arith.constant 0 : i32
    %c0_i32_1 = arith.constant 0 : i32
    return %c0_i32, %c0_i32_0 : i32, i32
  }
  func.func @transform_3(%arg0: i32) -> (i32, i32, i32) {
    %c0_i32 = arith.constant 0 : i32
    %c0_i32_0 = arith.constant 0 : i32
    %c0_i32_1 = arith.constant 0 : i32
    return %arg0, %c0_i32, %c0_i32_0 : i32, i32, i32
  }
}

</mosaic_0001>

<bundles_post_ra>
// kernel: tpu_custom_call.1
= control target key start
LH: loop header
LB: loop body
LE: loop exit
PB: predicated region body
PF: predicated region fallthrough
CT: control target
= control target key end

     0   :  { %8 = vsyncpa [#allocation4], 0  ;;  %s4749_s0 = inlined_call_operand.hbm [shape: f32[2,4,16,16], index: 0, kind: input, shape index: {}]   ;;  %s4750_s1 = inlined_call_operand.vmem [shape: f32[8,36], index: 1, kind: input, shape index: {}]   ;;  %s4751_s2 = inlined_call_operand.vmem [shape: f32[8,1], index: 2, kind: input, shape index: {}]   ;;  %s4752_s3 = inlined_call_operand.hbm [shape: f32[2,8,256], index: 3, kind: output, shape index: {}]  }
   0x1   :  { %10 = vsyncpa [#allocation4 + $0x1], 0 }
   0x2   :  { %11 = vsyncpa [#allocation5], 0 }
   0x3   :  { %13 = vsyncpa [#allocation5 + $0x1], 0  ;;  %s3049_s12 = smov 0   ;;  %s3051_s13 = smov 0  }
   0x4   :  { %s3053_s14 = smov 0   ;;  %s3055_s15 = smov 0  }
   0x5 LB: > { %s3070_s16 = sadd.s32 4294967295, %s3009_s15   ;;  %s2519_s17 = sadd.s32 4294967294, %s3009_s15   ;;  %s3009_s15 = sphi %s3055_s15, %s4963_s15   ;;  %s3005_s14 = sphi %s3053_s14, %s4962_s14   ;;  %s3001_s13 = sphi %s3051_s13, %s4961_s13   ;;  %s2997_s12 = sphi %s3049_s12, %s4960_s12  }
   0x6   : > { %s3074_s18 = sadd.s32 1, %s3009_s15   ;;  %s26_s19 = sadd.s32 1, %s3005_s14 }
   0x7   : > { %s23_s20 = ssub.s32 %s3009_s15, %s3074_s18  ;;  %p33_p0 = scmp.ne.s32.totalorder %s3005_s14, %s3001_s13 }
   0x8   : > { %p24_p1 = scmp.eq.s32.totalorder %s23_s20, 0  ;;  %p34_p2 = scmp.eq.s32.totalorder %s3009_s15, 0 }
   0x9   : > { %p39_p3 = scmp.ne.s32.totalorder %s3001_s13, %s2997_s12  ;;  %p40_p4 = scmp.eq.s32.totalorder %s3070_s16, 0 }
   0xa   : > { %s3086_s21 = scalar_select %p24_p1, %s3005_s14, %s26_s19  }
   0xb   : > { %p3088_p5 = por %p34_p2, %p33_p0  ;;  %p3092_p6 = por %p40_p4, %p39_p3 }
   0xc   : > { %p105_p7 = scmp.eq.s32.totalorder %s3070_s16, 1  ;;  %p111_p8 = scmp.eq.s32.totalorder %s2519_s17, 1 }
   0xd   : > { %p2558_p10 = scmp.lt.s32.totalorder %s3009_s15, 2  ;;  %s137_s26 = sand.u32 1, %s3005_s14  }
   0xe   : > { %p3099_p11 = por %p105_p7, %p33_p0  ;;  %p3103_p12 = por %p111_p8, %p39_p3 }
   0xf   : > { %s2536_s27 = sshll.u32 %s3009_s15, 10  ;;  %s2522_s28 = sshll.u32 %s137_s26, 6 }
  0x10   : > { %s4806_s24 = scalar_select %p3099_p11, 1, 0 }
  0x11   : > { %s4807_s25 = scalar_select %p3103_p12, 1, 0 }
  0x12   : > { %s3112_s4 = scalar_lea.hbm %s4749_s0, %s2536_s27  ;;  %s141_s5 = scalar_lea.vmem [#allocation3], %s2522_s28 }
  0x13   : > { %s148_s6 = sshll.u32 %s141_s5, 4  ;;  %p3116_p13 = pnand %p2558_p10, %p3088_p5  ;;  %s3120_s6 = int_to_ptr.vmem [resolvable:$true] %s148_s6 }
  0x14   : > { %s3122_s8 = scalar_lea.sflag [#allocation4], %s137_s26  ;;  %s2913_s9 = scalar_lea.hbm %s3112_s4, 1024 }
  0x15   : > { %p2914_p0 = scmp.ne.s32.totalorder %s3112_s4, %s2913_s9  ;;  %p2915_p1 = pneg %p3116_p13 }
  0x16   : > { %s2918_s17 = scalar_lea.hbm %s4749_s0, 2048  ;;  %p2919_p4 = scmp.lt.u32.totalorder %s3112_s4, %s4749_s0 }
  0x17   : > { %p2916_p2 = pnand %p2915_p1, %p2914_p0  ;;  %p2920_p5 = scmp.lt.u32.totalorder %s2918_s17, %s2913_s9 }
  0x18   : > { %p2922_p8 = scmp.lt.u32.totalorder %s2913_s9, %s3112_s4 }
  0x19   : > { %p2917_p3 = pneg %p2916_p2  ;;  %p2921_p7 = por %p2920_p5, %p2919_p4 }
  0x1b   : > { %p2923_p10 = por %p2922_p8, %p2921_p7 }
  0x1d   : > { %p2924_p9 = pnand %p2923_p10, %p2917_p3 }
  0x1f   : > { %2927 = shalt.err (!%p2924_p9)
}
  0x20   : > { %s2928_s22 = scalar_lea.vmem %s3120_s6, 1024  ;;  %s3011_s26 = smov [#allocation3]  }
  0x21   : > { %p2929_p0 = scmp.ne.s32.totalorder %s3120_s6, %s2928_s22  ;;  %s2933_s27 = sshll.u32 %s3011_s26, 4  ;;  %s2934_s27 = int_to_ptr.vmem [resolvable:$false] %s2933_s27 }
  0x22   : > { %s2935_s28 = scalar_lea.vmem %s2934_s27, 2048  ;;  %p2936_p11 = scmp.lt.s32.totalorder %s3120_s6, %s2934_s27 }
  0x23   : > { %p2931_p2 = pnand %p2929_p0, %p2915_p1  ;;  %p2937_p4 = scmp.lt.s32.totalorder %s2935_s28, %s2928_s22 }
  0x25   : > { %p2932_p12 = pneg %p2931_p2  ;;  %p2938_p5 = por %p2937_p4, %p2936_p11 }
  0x27   : > { %p2939_p7 = pnand %p2938_p5, %p2932_p12 }
  0x29   : > { %2942 = shalt.err (!%p2939_p7)
}
  0x2a   : > { %s3012_s29 = smov 128   ;;  %s3013_s30 = smov 8  }
  0x2b   : > { %2553 = dma.hbm_to_vmem [thread:$0]  (!%p3116_p13), %s3112_s4, 1024, %s3120_s6, %s3122_s8, %s3012_s29, %s3012_s29, %s3013_s30  }
  0x2c   : > { %p2525_p9 = scmp.ge.s32.totalorder %s3009_s15, 1  ;;  %p156_p1 = scmp.lt.s32.totalorder %s3009_s15, 3 }
  0x2e   : > { %p157_p3 = pnand %p2525_p9, %p156_p1 }
  0x30   : > { %160 = sbr.rel (%p157_p3) target bundleno = 854 (0x356), region = 32 }
  0x37   : > { %s3153_s5 = sand.u32 1, %s3001_s13  }
  0x38   : > { %s2526_s9 = sshll.u32 %s3153_s5, 6  ;;  %s163_s10 = scalar_lea.sflag [#allocation4], %s3153_s5 }
  0x39   : > { %s3157_s11 = scalar_lea.vmem [#allocation3], %s2526_s9 }
  0x3a   : > { %2988 = dma.done.wait (%p3092_p6), %s163_s10, 1024  }
  0x3b   : > { %2990 = vsyncadd (%p3092_p6), %s163_s10, 4294966272  ;;  %vm189_vm0 = vcmask 146432   ;;  %vm192_vm1 = vcmask 140288   ;;  %v4754_v0 = vmov 0.0   ;;  %v205_v1 = vld [vmem:[%s3157_s11 + $0x10] sm:$0xff]  ;;  %v203_v2 = vld [vmem:[%s3157_s11] sm:$0xff]  ;;  %v265_v17 = vlaneseq }
  0x3c   : > { %194 = vst.msk [vmem:[#allocation2 + $0x18] sm:$0xff] %vm189_vm0, %v4754_v0  ;;  %195 = vst.msk [vmem:[#allocation2 + $0x20] sm:$0xff] %vm189_vm0, %v4754_v0  ;;  %2419 = vmatprep.mubr.f32.mxu0 %v4754_v0  ;;  %s3015_s23 = smov 1   ;;  %v206_v3 = vld [vmem:[%s3157_s11 + $0x18] sm:$0xff]  ;;  %v204_v4 = vld [vmem:[%s3157_s11 + $0x8] sm:$0xff]  ;;  %vm243_vm2 = vcmask 138248  }
  0x3d   : > { %190 = vst.msk [vmem:[#allocation2] sm:$0xff] %vm189_vm0, %v4754_v0  ;;  %191 = vst.msk [vmem:[#allocation2 + $0x8] sm:$0xff] %vm189_vm0, %v4754_v0  ;;  %223 = vrot.lane.b32.xlu1 %v205_v1, %s3015_s23  ;;  %219 = vrot.lane.b32.xlu0 %v203_v2, %s3015_s23  ;;  %v208_v5 = vld [vmem:[%s3157_s11 + $0x28] sm:$0xff]  ;;  %v207_v6 = vld [vmem:[%s3157_s11 + $0x20] sm:$0xff]  ;;  %v3016_v15 = vmov 1983009808  }
  0x3e   : > { %197 = vst.msk [vmem:[#allocation2 + $0x30] sm:$0xff] %vm189_vm0, %v4754_v0  ;;  %198 = vst.msk [vmem:[#allocation2 + $0x38] sm:$0xff] %vm189_vm0, %v4754_v0  ;;  %v210_v7 = vld [vmem:[%s3157_s11 + $0x38] sm:$0xff]  ;;  %v209_v8 = vld [vmem:[%s3157_s11 + $0x30] sm:$0xff]  ;;  %v263_v16 = vunpack.c.l.s4 %v3016_v15  ;;  %s3017_s4 = smov 127   ;;  %v3200_v23 = vshrl.u32 %v265_v17, 7 }
  0x3f   : > { %200 = vst.msk [vmem:[#allocation2 + $0x48] sm:$0xff] %vm189_vm0, %v4754_v0  ;;  %201 = vst.msk [vmem:[#allocation2 + $0x50] sm:$0xff] %vm189_vm0, %v4754_v0  ;;  %s3018_s6 = smov 126   ;;  %s3020_s7 = smov 32   ;;  %vm452_vm3 = vcmask 130048   ;;  %vm454_vm4 = vcmask 261120  }
  0x40   : > { %196 = vst.msk [vmem:[#allocation2 + $0x28] sm:$0x3] %vm192_vm1, %v4754_v0  ;;  %193 = vst.msk [vmem:[#allocation2 + $0x10] sm:$0x3] %vm192_vm1, %v4754_v0  ;;  %v264_v22 = vunpack.c.0.s8 %v263_v16  ;;  %s3021_s8 = smov 64   ;;  %s3022_s17 = smov 96  }
  0x41   : > { %199 = vst.msk [vmem:[#allocation2 + $0x40] sm:$0x3] %vm192_vm1, %v4754_v0  ;;  %202 = vst.msk [vmem:[#allocation2 + $0x58] sm:$0x3] %vm192_vm1, %v4754_v0  ;;  %225 = vrot.lane.b32.xlu1 %v206_v3, %s3015_s23  ;;  %221 = vrot.lane.b32.xlu0 %v204_v4, %s3015_s23  ;;  %s3023_s19 = smov 16   ;;  %s3024_s20 = smov 48  }
  0x42   : > { %v3229_v36 = vsub.s32 %v264_v22, %v3200_v23  ;;  %s3025_s22 = smov 80   ;;  %s3026_s26 = smov 112   ;;  %vm456_vm5 = vcmask 392192   ;;  %vm458_vm6 = vcmask 523264   ;;  %vm460_vm7 = vcmask 654336  }
  0x43   : > { %vm462_vm8 = vcmask 785408   ;;  %vm464_vm9 = vcmask 916480   ;;  %vm2329_vm10 = vcmask 1043456   ;;  %vm2345_vm11 = vcmask 293888   ;;  %s2527_s9 = sshll.u32 %s3153_s5, 4  ;;  %s2537_s10 = sshll.u32 %s3070_s16, 8 }
  0x44   : > { %s188_s11 = scalar_lea.vmem [#allocation6], %s2527_s9  ;;  %s2435_s16 = scalar_lea.sflag [#allocation5], %s3153_s5 }
  0x45   : > { %229 = vrot.lane.b32.xlu1 %v208_v5, %s3015_s23  ;;  %227 = vrot.lane.b32.xlu0 %v207_v6, %s3015_s23  ;;  %p4957_p11 = scmp.ne.s32.totalorder %s4806_s24, 0 }
  0x49   : > { %233 = vrot.lane.b32.xlu1 %v210_v7, %s3015_s23  ;;  %231 = vrot.lane.b32.xlu0 %v209_v8, %s3015_s23  ;;  %s2449_s23 = sshll.u32 %s188_s11, 4  ;;  %s4707_s23 = int_to_ptr.vmem [resolvable:$true] %s2449_s23 }
  0xaf   : > { %v224_v9 = vpop.permute.xlu1 %223  ;;  %v220_v10 = vpop.permute.xlu0 %219 }
  0xb0   : > { %246 = vst.msk [vmem:[#allocation2 + $0x19] sm:$0xff] %vm243_vm2, %v224_v9  ;;  %244 = vst.msk [vmem:[#allocation2 + $0x1] sm:$0xff] %vm243_vm2, %v220_v10 }
  0xb3   : > { %v226_v11 = vpop.permute.xlu1 %225  ;;  %v222_v12 = vpop.permute.xlu0 %221 }
  0xb4   : > { %247 = vst.msk [vmem:[#allocation2 + $0x21] sm:$0xff] %vm243_vm2, %v226_v11  ;;  %245 = vst.msk [vmem:[#allocation2 + $0x9] sm:$0xff] %vm243_vm2, %v222_v12 }
  0xb7   : > { %v230_v13 = vpop.permute.xlu1 %229  ;;  %v228_v14 = vpop.permute.xlu0 %227  ;;  %v3202_v24 = vld [vmem:[#allocation2] sm:$0xff]  ;;  %v3231_v37 = vld [vmem:[#allocation2 + $0x18] sm:$0xff] }
  0xb8   : > { %249 = vst.msk [vmem:[#allocation2 + $0x39] sm:$0xff] %vm243_vm2, %v230_v13  ;;  %248 = vst.msk [vmem:[#allocation2 + $0x31] sm:$0xff] %vm243_vm2, %v228_v14  ;;  %v3297_v1 = vld [vmem:[#allocation2 + $0x1] sm:$0xff]  ;;  %v3308_v4 = vld [vmem:[#allocation2 + $0x19] sm:$0xff] }
  0xbb   : > { %v234_v18 = vpop.permute.xlu1 %233  ;;  %v232_v19 = vpop.permute.xlu0 %231  ;;  %v3190_v20 = vld [vmem:[#allocation2 + $0x20] sm:$0xff]  ;;  %v3192_v21 = vld [vmem:[#allocation2 + $0x8] sm:$0xff] }
  0xbc   : > { %251 = vst.msk [vmem:[#allocation2 + $0x51] sm:$0xff] %vm243_vm2, %v234_v18  ;;  %250 = vst.msk [vmem:[#allocation2 + $0x49] sm:$0xff] %vm243_vm2, %v232_v19  ;;  %487 = vrot.lane.b32.xlu1 %v3190_v20, %s3017_s4  ;;  %483 = vrot.lane.b32.xlu0 %v3192_v21, %s3017_s4  ;;  %v3220_v32 = vld [vmem:[#allocation2 + $0x9] sm:$0xff]  ;;  %v3253_v46 = vld [vmem:[#allocation2 + $0x21] sm:$0xff] }
  0xbd   : > { %v3233_v38 = vld [vmem:[#allocation2 + $0xa] sm:$0xff]  ;;  %v3255_v47 = vld [vmem:[#allocation2 + $0x22] sm:$0xff]  ;;  %v3322_v11 = vld [vmem:[#allocation2 + $0x1a] sm:$0xff] }
  0xbe   : > { %v3314_v7 = vld [vmem:[#allocation2 + $0x2] sm:$0xff] }
  0xbf   : > { %v3204_v25 = vld [vmem:[#allocation2 + $0x38] sm:$0xff]  ;;  %v3206_v26 = vld [vmem:[#allocation2 + $0x30] sm:$0xff] }
  0xc0   : > { %v3208_v27 = vld [vmem:[#allocation2 + $0x39] sm:$0xff]  ;;  %491 = vrot.lane.b32.xlu0 %v3204_v25, %s3017_s4  ;;  %v328_v28 = vcombine.low %v3192_v21, %v3204_v25  ;;  %v329_v29 = vcombine.high %v3192_v21, %v3204_v25  ;;  %v260_v30 = vcombine.low %v3202_v24, %v3206_v26  ;;  %v261_v31 = vcombine.high %v3202_v24, %v3206_v26  ;;  %v3267_v53 = vld [vmem:[#allocation2 + $0x31] sm:$0xff] }
  0xc1   : > { %v3222_v33 = vld [vmem:[#allocation2 + $0x3a] sm:$0xff]  ;;  %v1017_v34 = vcombine.low %v3220_v32, %v3208_v27  ;;  %v1018_v35 = vcombine.high %v3220_v32, %v3208_v27  ;;  %v3283_v59 = vld [vmem:[#allocation2 + $0x32] sm:$0xff]  ;;  %v949_v5 = vcombine.low %v3297_v1, %v3267_v53  ;;  %v950_v6 = vcombine.high %v3297_v1, %v3267_v53 }
  0xc2   : > { %v1699_v42 = vcombine.low %v3233_v38, %v3222_v33  ;;  %v3270_v54 = vrot.slane %v328_v28, %v3229_v36  ;;  %v3273_v55 = vrot.slane %v260_v30, %v3229_v36  ;;  %v3276_v56 = vrot.slane %v261_v31, %v3229_v36 }
  0xc3   : > { %v3235_v39 = vld [vmem:[#allocation2 + $0x50] sm:$0xff]  ;;  %v3237_v40 = vld [vmem:[#allocation2 + $0x48] sm:$0xff]  ;;  %v3279_v57 = vrot.slane %v1017_v34, %v3229_v36  ;;  %v1631_v12 = vcombine.low %v3314_v7, %v3283_v59  ;;  %v3333_v15 = vrot.slane %v1018_v35, %v3229_v36  ;;  %v3341_v18 = vrot.slane %v949_v5, %v3229_v36 }
  0xc4   : > { %v3239_v41 = vld [vmem:[#allocation2 + $0x51] sm:$0xff]  ;;  %495 = vrot.lane.b32.xlu1 %v3235_v39, %s3017_s4  ;;  %v344_v43 = vcombine.low %v3190_v20, %v3235_v39  ;;  %v345_v44 = vcombine.high %v3190_v20, %v3235_v39  ;;  %481 = vrot.lane.b32.xlu0 %v3202_v24, %s3017_s4  ;;  %v276_v45 = vcombine.low %v3231_v37, %v3237_v40  ;;  %v3281_v58 = vld [vmem:[#allocation2 + $0x49] sm:$0xff] }
  0xc5   : > { %v3257_v48 = vld [vmem:[#allocation2 + $0x52] sm:$0xff]  ;;  %v277_v49 = vcombine.high %v3231_v37, %v3237_v40  ;;  %v1033_v50 = vcombine.low %v3253_v46, %v3239_v41  ;;  %v1034_v51 = vcombine.high %v3253_v46, %v3239_v41  ;;  %4809 = vst [vmem:[#allocation9_spill] sm:$0xff] %v3270_v54  ;;  %v3292_v62 = vrot.slane %v1699_v42, %v3229_v36  ;;  %v3299_v2 = vld [vmem:[#allocation2 + $0x4a] sm:$0xff] }
  0xc6   : > { %v1715_v52 = vcombine.low %v3255_v47, %v3257_v48  ;;  %v3286_v60 = vrot.slane %v344_v43, %v3229_v36  ;;  %v965_v9 = vcombine.low %v3308_v4, %v3281_v58  ;;  %v966_v10 = vcombine.high %v3308_v4, %v3281_v58 }
  0xc7   : > { %v3289_v61 = vrot.slane %v1033_v50, %v3229_v36  ;;  %4811 = vst [vmem:[#allocation11_spill] sm:$0xff] %v3292_v62  ;;  %v3306_v3 = vrot.slane %v1034_v51, %v3229_v36  ;;  %v3327_v13 = vrot.slane %v276_v45, %v3229_v36  ;;  %v3330_v14 = vrot.slane %v277_v49, %v3229_v36 }
  0xc8   : > { %4810 = vst [vmem:[#allocation10_spill] sm:$0xff] %v3286_v60  ;;  %v3295_v63 = vrot.slane %v1715_v52, %v3229_v36  ;;  %485 = vrot.lane.b32.xlu1 %v3231_v37, %s3017_s4  ;;  %489 = vrot.lane.b32.xlu0 %v3206_v26, %s3017_s4  ;;  %v1647_v16 = vcombine.low %v3322_v11, %v3299_v2 }
  0xc9   : > { %v3338_v17 = vrot.slane %v345_v44, %v3229_v36  ;;  %v3344_v19 = vrot.slane %v965_v9, %v3229_v36  ;;  %v3347_v22 = vrot.slane %v966_v10, %v3229_v36  ;;  %v3354_v28 = vrot.slane %v1631_v12, %v3229_v36 }
  0xca   : > { %4812 = vst [vmem:[#allocation12_spill] sm:$0xff] %v3295_v63  ;;  %v3357_v30 = vrot.slane %v1647_v16, %v3229_v36  ;;  %v1050_v31 = vcombine.high %v3279_v57, %v3289_v61  ;;  %v3362_v34 = vrot.slane %v950_v6, %v3229_v36  ;;  %v361_v42 = vcombine.high %v3270_v54, %v3286_v60 }
  0xcb   : > { %4813 = vst [vmem:[#allocation13_spill] sm:$0xff] %v3354_v28  ;;  %v982_v35 = vcombine.high %v3341_v18, %v3344_v19  ;;  %v3380_v50 = vrot.slane %v329_v29, %v3229_v36 }
  0xcc   : > { %493 = vrot.lane.b32.xlu1 %v3237_v40, %s3017_s4  ;;  %713 = vrot.lane.b32.xlu0 %v3192_v21, %s3018_s6  ;;  %4814 = vst [vmem:[#allocation14_spill] sm:$0xff] %v3357_v30 }
  0xd0   : > { %717 = vrot.lane.b32.xlu1 %v3190_v20, %s3018_s6  ;;  %721 = vrot.lane.b32.xlu0 %v3204_v25, %s3018_s6 }
  0xd4   : > { %725 = vrot.lane.b32.xlu1 %v3235_v39, %s3018_s6  ;;  %711 = vrot.lane.b32.xlu0 %v3202_v24, %s3018_s6 }
  0xd8   : > { %715 = vrot.lane.b32.xlu1 %v3231_v37, %s3018_s6  ;;  %719 = vrot.lane.b32.xlu0 %v3206_v26, %s3018_s6 }
  0xdc   : > { %723 = vrot.lane.b32.xlu1 %v3237_v40, %s3018_s6  ;;  %1395 = vrot.lane.b32.xlu0 %v3220_v32, %s3018_s6 }
  0xe0   : > { %1399 = vrot.lane.b32.xlu1 %v3253_v46, %s3018_s6  ;;  %1403 = vrot.lane.b32.xlu0 %v3208_v27, %s3018_s6 }
  0xe4   : > { %1407 = vrot.lane.b32.xlu1 %v3239_v41, %s3018_s6  ;;  %1847 = vrot.lane.b32.xlu0 %v3233_v38, %s3017_s4 }
  0xe8   : > { %1851 = vrot.lane.b32.xlu1 %v3255_v47, %s3017_s4  ;;  %1855 = vrot.lane.b32.xlu0 %v3222_v33, %s3017_s4 }
  0xec   : > { %1859 = vrot.lane.b32.xlu1 %v3257_v48, %s3017_s4  ;;  %1393 = vrot.lane.b32.xlu0 %v3297_v1, %s3018_s6 }
  0xf0   : > { %1397 = vrot.lane.b32.xlu1 %v3308_v4, %s3018_s6  ;;  %1401 = vrot.lane.b32.xlu0 %v3267_v53, %s3018_s6 }
  0xf4   : > { %1405 = vrot.lane.b32.xlu1 %v3281_v58, %s3018_s6  ;;  %1845 = vrot.lane.b32.xlu0 %v3314_v7, %s3017_s4 }
  0xf8   : > { %1849 = vrot.lane.b32.xlu1 %v3322_v11, %s3017_s4  ;;  %1853 = vrot.lane.b32.xlu0 %v3283_v59, %s3017_s4 }
  0xfc   : > { %1857 = vrot.lane.b32.xlu1 %v3299_v2, %s3017_s4  ;;  %1165 = vrot.lane.b32.xlu0 %v3220_v32, %s3017_s4 }
 0x100   : > { %1169 = vrot.lane.b32.xlu1 %v3253_v46, %s3017_s4  ;;  %1173 = vrot.lane.b32.xlu0 %v3208_v27, %s3017_s4  ;;  %v3019_v27 = vmov 1934713408  }
 0x101   : > { %v295_v32 = vunpack.c.l.s4 %v3019_v27 }
 0x104   : > { %1177 = vrot.lane.b32.xlu1 %v3239_v41, %s3017_s4  ;;  %1163 = vrot.lane.b32.xlu0 %v3297_v1, %s3017_s4  ;;  %v296_v41 = vunpack.c.0.s8 %v295_v32 }
 0x106   : > { %v3487_v10 = vsub.s32 %v296_v41, %v3200_v23 }
 0x108   : > { %1167 = vrot.lane.b32.xlu1 %v3308_v4, %s3017_s4  ;;  %1171 = vrot.lane.b32.xlu0 %v3267_v53, %s3017_s4 }
 0x10c   : > { %1175 = vrot.lane.b32.xlu1 %v3281_v58, %s3017_s4  ;;  %2077 = vrot.lane.b32.xlu0 %v3233_v38, %s3018_s6 }
 0x110   : > { %2081 = vrot.lane.b32.xlu1 %v3255_v47, %s3018_s6  ;;  %2085 = vrot.lane.b32.xlu0 %v3222_v33, %s3018_s6 }
 0x114   : > { %2089 = vrot.lane.b32.xlu1 %v3257_v48, %s3018_s6  ;;  %2075 = vrot.lane.b32.xlu0 %v3314_v7, %s3018_s6 }
 0x118   : > { %2079 = vrot.lane.b32.xlu1 %v3322_v11, %s3018_s6  ;;  %2083 = vrot.lane.b32.xlu0 %v3283_v59, %s3018_s6 }
 0x11c   : > { %2087 = vrot.lane.b32.xlu1 %v3299_v2, %s3018_s6 }
 0x12e   : > { %v484_v26 = vpop.permute.xlu0 %483  ;;  %v488_v37 = vpop.permute.xlu1 %487 }
 0x132   : > { %v492_v39 = vpop.permute.xlu0 %491 }
 0x133   : > { %v573_v40 = vcombine.low %v484_v26, %v492_v39  ;;  %v574_v6 = vcombine.high %v484_v26, %v492_v39 }
 0x135   : > { %v3481_v1 = vrot.slane %v573_v40, %v3229_v36  ;;  %v3500_v40 = vrot.slane %v1050_v31, %v3487_v10  ;;  %v3530_v26 = vrot.slane %v574_v6, %v3229_v36 }
 0x136   : > { %v496_v46 = vpop.permute.xlu1 %495  ;;  %v482_v53 = vpop.permute.xlu0 %481 }
 0x137   : > { %v589_v58 = vcombine.low %v488_v37, %v496_v46  ;;  %4816 = vst [vmem:[#allocation16_spill] sm:$0xff] %v3500_v40 }
 0x139   : > { %v3484_v4 = vrot.slane %v589_v58, %v3229_v36 }
 0x13a   : > { %v486_v12 = vpop.permute.xlu1 %485  ;;  %v490_v16 = vpop.permute.xlu0 %489 }
 0x13b   : > { %v606_v32 = vcombine.high %v3481_v1, %v3484_v4  ;;  %v505_v44 = vcombine.low %v482_v53, %v490_v16  ;;  %v506_v49 = vcombine.high %v482_v53, %v490_v16 }
 0x13d   : > { %v3494_v8 = vrot.slane %v606_v32, %v3487_v10  ;;  %v3505_v9 = vrot.slane %v505_v44, %v3229_v36  ;;  %v590_v32 = vcombine.high %v488_v37, %v496_v46 }
 0x13e   : > { %v494_v23 = vpop.permute.xlu1 %493  ;;  %v714_v41 = vpop.permute.xlu0 %713 }
 0x13f   : > { %4815 = vst [vmem:[#allocation15_spill] sm:$0xff] %v3494_v8  ;;  %v521_v58 = vcombine.low %v486_v12, %v494_v23  ;;  %v2608_v24 = vpack.i.bf16 %v3500_v40, %v3494_v8 }
 0x141   : > { %v3508_v25 = vrot.slane %v521_v58, %v3229_v36  ;;  %2609 = vrot.lane.b32.xlu0 %v2608_v24, %s3020_s7  ;;  %v3522_v58 = vrot.slane %v982_v35, %v3487_v10  ;;  %v3525_v24 = vrot.slane %v590_v32, %v3229_v36  ;;  %v522_v32 = vcombine.high %v486_v12, %v494_v23 }
 0x142   : > { %v718_v20 = vpop.permute.xlu1 %717  ;;  %v722_v27 = vpop.permute.xlu0 %721 }
 0x143   : > { %v538_v0 = vcombine.high %v3505_v9, %v3508_v25  ;;  %v803_v29 = vcombine.low %v714_v41, %v722_v27  ;;  %v621_v35 = vcombine.low %v3530_v26, %v3525_v24  ;;  %v536_v12 = vrot.slane %v522_v32, %v3229_v36 }
 0x145   : > { %v3516_v44 = vrot.slane %v538_v0, %v3487_v10  ;;  %v3533_v0 = vrot.slane %v803_v29, %v3229_v36  ;;  %v3556_v51 = vrot.slane %v621_v35, %v3487_v10 }
 0x146   : > { %v726_v37 = vpop.permute.xlu1 %725  ;;  %v712_v46 = vpop.permute.xlu0 %711 }
 0x147   : > { %v819_v31 = vcombine.low %v718_v20, %v726_v37  ;;  %v2613_v21 = vpack.i.bf16 %v3522_v58, %v3516_v44  ;;  %4817 = vst [vmem:[#allocation17_spill] sm:$0xff] %v3533_v0  ;;  %4821 = vst [vmem:[#allocation21_spill] sm:$0xff] %v3556_v51  ;;  %v820_v40 = vcombine.high %v718_v20, %v726_v37 }
 0x149   : > { %v3536_v39 = vrot.slane %v819_v31, %v3229_v36  ;;  %2614 = vrot.lane.b32.xlu0 %v2613_v21, %s3020_s7  ;;  %v3549_v21 = vrot.slane %v361_v42, %v3487_v10  ;;  %v804_v42 = vcombine.high %v714_v41, %v722_v27 }
 0x14a   : > { %v716_v5 = vpop.permute.xlu1 %715  ;;  %v720_v52 = vpop.permute.xlu0 %719 }
 0x14b   : > { %4818 = vst [vmem:[#allocation18_spill] sm:$0xff] %v3536_v39  ;;  %v836_v6 = vcombine.high %v3533_v0, %v3536_v39  ;;  %v735_v29 = vcombine.low %v712_v46, %v720_v52  ;;  %v736_v45 = vcombine.high %v712_v46, %v720_v52  ;;  %4819 = vst [vmem:[#allocation19_spill] sm:$0xff] %v3549_v21 }
 0x14c   : > { %v520_v46 = vrot.slane %v506_v49, %v3229_v36 }
 0x14d   : > { %v3552_v31 = vrot.slane %v836_v6, %v3487_v10  ;;  %v4822_v6 = vcombine.low %v3333_v15, %v3306_v3  ;;  %v3568_v32 = vrot.slane %v735_v29, %v3229_v36  ;;  %v3571_v35 = vrot.slane %v736_v45, %v3229_v36 }
 0x14e   : > { %v724_v23 = vpop.permute.xlu1 %723  ;;  %v1396_v43 = vpop.permute.xlu0 %1395  ;;  %v553_v49 = vcombine.low %v520_v46, %v536_v12  ;;  %v554_v27 = vcombine.high %v520_v46, %v536_v12  ;;  %v834_v29 = vrot.slane %v820_v40, %v3229_v36  ;;  %v4824_v12 = vcombine.low %v3276_v56, %v3330_v14 }
 0x14f   : > { %4820 = vst [vmem:[#allocation20_spill] sm:$0xff] %v3552_v31  ;;  %v751_v53 = vcombine.low %v716_v5, %v724_v23  ;;  %v752_v16 = vcombine.high %v716_v5, %v724_v23  ;;  %v2618_v52 = vpack.i.bf16 %v3552_v31, %v3549_v21  ;;  %v3565_v8 = vrot.slane %v4822_v6, %v3487_v10 }
 0x151   : > { %4823 = vst [vmem:[#allocation22_spill] sm:$0xff] %v3565_v8  ;;  %v3574_v5 = vrot.slane %v751_v53, %v3229_v36  ;;  %v766_v20 = vrot.slane %v752_v16, %v3229_v36  ;;  %2619 = vrot.lane.b32.xlu1 %v2618_v52, %s3020_s7  ;;  %v2623_v23 = vpack.i.bf16 %v3565_v8, %v3556_v51 }
 0x152   : > { %v1400_v41 = vpop.permute.xlu1 %1399  ;;  %v1404_v37 = vpop.permute.xlu0 %1403  ;;  %v818_v16 = vrot.slane %v804_v42, %v3229_v36  ;;  %v3592_v52 = vrot.slane %v4824_v12, %v3487_v10  ;;  %v4827_v42 = vcombine.high %v3273_v55, %v3327_v13  ;;  %v3610_v12 = vrot.slane %v553_v49, %v3487_v10 }
 0x153   : > { %v768_v53 = vcombine.high %v3568_v32, %v3574_v5  ;;  %v783_v6 = vcombine.low %v3571_v35, %v766_v20  ;;  %v1485_v54 = vcombine.low %v1396_v43, %v1404_v37  ;;  %v1486_v39 = vcombine.high %v1396_v43, %v1404_v37 }
 0x154   : > { %4825 = vst [vmem:[#allocation23_spill] sm:$0xff] %v3592_v52  ;;  %v3604_v51 = vrot.slane %v4827_v42, %v3487_v10  ;;  %4830 = vst [vmem:[#allocation27_spill] sm:$0xff] %v3610_v12  ;;  %v852_v21 = vcombine.high %v818_v16, %v834_v29  ;;  %v851_v60 = vcombine.low %v818_v16, %v834_v29 }
 0x155   : > { %2624 = vrot.lane.b32.xlu1 %v2623_v23, %s3021_s8  ;;  %v3595_v40 = vrot.slane %v783_v6, %v3487_v10  ;;  %v3598_v46 = vrot.slane %v768_v53, %v3487_v10  ;;  %v3607_v23 = vrot.slane %v554_v27, %v3487_v10  ;;  %v4831_v27 = vcombine.high %v3362_v34, %v3347_v22 }
 0x156   : > { %v1408_v45 = vpop.permute.xlu1 %1407  ;;  %v1848_v8 = vpop.permute.xlu0 %1847  ;;  %4828 = vst [vmem:[#allocation25_spill] sm:$0xff] %v3604_v51  ;;  %v4833_v37 = vcombine.low %v3362_v34, %v3347_v22  ;;  %v622_v16 = vcombine.high %v3530_v26, %v3525_v24  ;;  %v3649_v34 = vrot.slane %v851_v60, %v3487_v10 }
 0x157   : > { %4826 = vst [vmem:[#allocation24_spill] sm:$0xff] %v3598_v46  ;;  %4829 = vst [vmem:[#allocation26_spill] sm:$0xff] %v3607_v23  ;;  %v1501_v6 = vcombine.low %v1400_v41, %v1408_v45  ;;  %v1502_v31 = vcombine.high %v1400_v41, %v1408_v45  ;;  %v2653_v53 = vpack.i.bf16 %v3595_v40, %v3592_v52 }
 0x158   : > { %v2628_v0 = vpack.i.bf16 %v3598_v46, %v3604_v51  ;;  %v3621_v49 = vrot.slane %v4831_v27, %v3487_v10  ;;  %v3632_v45 = vrot.slane %v4833_v37, %v3487_v10  ;;  %v1500_v27 = vrot.slane %v1486_v39, %v3229_v36 }
 0x159   : > { %2654 = vrot.lane.b32.xlu1 %v2653_v53, %s3021_s8  ;;  %v3624_v42 = vrot.slane %v1501_v6, %v3229_v36  ;;  %v1516_v41 = vrot.slane %v1502_v31, %v3229_v36  ;;  %v784_v53 = vcombine.high %v3571_v35, %v766_v20  ;;  %v3640_v31 = vrot.slane %v852_v21, %v3487_v10 }
 0x15a   : > { %4832 = vst [vmem:[#allocation28_spill] sm:$0xff] %v3621_v49  ;;  %2629 = vrot.lane.b32.xlu0 %v2628_v0, %s3020_s7  ;;  %v1852_v29 = vpop.permute.xlu1 %1851  ;;  %v1856_v43 = vpop.permute.xlu0 %1855  ;;  %4834 = vst [vmem:[#allocation29_spill] sm:$0xff] %v3632_v45  ;;  %v2658_v6 = vpack.i.bf16 %v3621_v49, %v3607_v23  ;;  %v3643_v0 = vrot.slane %v1485_v54, %v3229_v36  ;;  %v2633_v22 = vpack.i.bf16 %v3632_v45, %v3610_v12 }
 0x15b   : > { %4835 = vst [vmem:[#allocation30_spill] sm:$0xff] %v3640_v31  ;;  %v1937_v24 = vcombine.low %v1848_v8, %v1856_v43  ;;  %v1938_v26 = vcombine.high %v1848_v8, %v1856_v43  ;;  %v4836_v21 = vcombine.high %v3380_v50, %v3338_v17  ;;  %v1533_v39 = vcombine.low %v1500_v27, %v1516_v41 }
 0x15c   : > { %v1518_v54 = vcombine.high %v3643_v0, %v3624_v42  ;;  %v4838_v8 = vcombine.low %v3380_v50, %v3338_v17  ;;  %v3670_v45 = vrot.slane %v784_v53, %v3487_v10  ;;  %v1534_v12 = vcombine.high %v1500_v27, %v1516_v41 }
 0x15d   : > { %2659 = vrot.lane.b32.xlu1 %v2658_v6, %s3022_s17  ;;  %v3656_v35 = vrot.slane %v4836_v21, %v3487_v10  ;;  %v4840_v51 = vcombine.high %v3276_v56, %v3330_v14  ;;  %v3681_v17 = vrot.slane %v622_v16, %v3487_v10  ;;  %v3684_v50 = vrot.slane %v1937_v24, %v3229_v36 }
 0x15e   : > { %2634 = vrot.lane.b32.xlu0 %v2633_v22, %s3021_s8  ;;  %v1860_v20 = vpop.permute.xlu1 %1859  ;;  %v1394_v60 = vpop.permute.xlu0 %1393  ;;  %v3665_v43 = vrot.slane %v4838_v8, %v3487_v10  ;;  %4839 = vst [vmem:[#allocation32_spill] sm:$0xff] %v3670_v45  ;;  %v1532_v27 = vrot.slane %v1518_v54, %v3487_v10  ;;  %v3701_v24 = vrot.slane %v1533_v39, %v3487_v10 }
 0x15f   : > { %4837 = vst [vmem:[#allocation31_spill] sm:$0xff] %v3656_v35  ;;  %v1953_v37 = vcombine.low %v1852_v29, %v1860_v20  ;;  %v1954_v6 = vcombine.high %v1852_v29, %v1860_v20  ;;  %v2668_v21 = vpack.i.bf16 %v3640_v31, %v3656_v35  ;;  %v3678_v46 = vrot.slane %v4840_v51, %v3487_v10 }
 0x160   : > { %v2638_v22 = vpack.i.bf16 %v3649_v34, %v3665_v43  ;;  %v1952_v29 = vrot.slane %v1938_v26, %v3229_v36  ;;  %v4842_v51 = vcombine.high %v3333_v15, %v3306_v3  ;;  %v3710_v3 = vrot.slane %v1534_v12, %v3487_v10 }
 0x161   : > { %4841 = vst [vmem:[#allocation33_spill] sm:$0xff] %v3678_v46  ;;  %v3688_v53 = vrot.slane %v1953_v37, %v3229_v36  ;;  %v1968_v41 = vrot.slane %v1954_v6, %v3229_v36  ;;  %2669 = vrot.lane.b32.xlu1 %v2668_v21, %s3022_s17  ;;  %v2683_v37 = vpack.i.bf16 %v3670_v45, %v3678_v46 }
 0x162   : > { %2639 = vrot.lane.b32.xlu0 %v2638_v22, %s3021_s8  ;;  %v1398_v56 = vpop.permute.xlu1 %1397  ;;  %v1402_v14 = vpop.permute.xlu0 %1401  ;;  %v3697_v16 = vrot.slane %v4842_v51, %v3487_v10  ;;  %v1700_v49 = vcombine.high %v3233_v38, %v3222_v33 }
 0x163   : > { %v1970_v26 = vcombine.high %v3684_v50, %v3688_v53  ;;  %v1985_v20 = vcombine.low %v1952_v29, %v1968_v41  ;;  %v1986_v8 = vcombine.high %v1952_v29, %v1968_v41  ;;  %v1417_v15 = vcombine.low %v1394_v60, %v1402_v14 }
 0x164   : > { %v2643_v6 = vpack.i.bf16 %v3697_v16, %v3681_v17  ;;  %v4843_v41 = vmov 0.0   ;;  %v1418_v45 = vcombine.high %v1394_v60, %v1402_v14 }
 0x165   : > { %2684 = vrot.lane.b32.xlu1 %v2683_v37, %s3022_s17  ;;  %v1984_v54 = vrot.slane %v1970_v26, %v3487_v10  ;;  %v3715_v39 = vrot.slane %v1985_v20, %v3487_v10  ;;  %v3718_v21 = vrot.slane %v1986_v8, %v3487_v10  ;;  %v3722_v51 = vcombine.high %v1532_v27, %v4843_v41 }
 0x166   : > { %2644 = vrot.lane.b32.xlu0 %v2643_v6, %s3022_s17  ;;  %v1406_v22 = vpop.permute.xlu1 %1405  ;;  %v1846_v29 = vpop.permute.xlu0 %1845  ;;  %v3726_v12 = vcombine.high %v3701_v24, %v4843_v41  ;;  %v3737_v6 = vcombine.high %v3710_v3, %v4843_v41  ;;  %v3744_v31 = vrot.slane %v1417_v15, %v3229_v36 }
 0x167   : > { %4844 = vst [vmem:[#allocation34_spill] sm:$0xff] %v3722_v51  ;;  %v1433_v37 = vcombine.low %v1398_v56, %v1406_v22  ;;  %v1434_v46 = vcombine.high %v1398_v56, %v1406_v22  ;;  %v2648_v26 = vpack.i.bf16 %v1984_v54, %v1532_v27  ;;  %v3729_v20 = vcombine.high %v1984_v54, %v4843_v41 }
 0x168   : > { %4845 = vst [vmem:[#allocation35_spill] sm:$0xff] %v3726_v12  ;;  %v3733_v8 = vcombine.high %v3715_v39, %v4843_v41  ;;  %4848 = vst [vmem:[#allocation38_spill] sm:$0xff] %v3737_v6  ;;  %v3741_v35 = vcombine.high %v3718_v21, %v4843_v41 }
 0x169   : > { %4846 = vst [vmem:[#allocation36_spill] sm:$0xff] %v3729_v20  ;;  %4850 = vst [vmem:[#allocation40_spill] sm:$0xff] %v3744_v31  ;;  %v3747_v56 = vrot.slane %v1433_v37, %v3229_v36  ;;  %v1448_v14 = vrot.slane %v1434_v46, %v3229_v36  ;;  %v1432_v37 = vrot.slane %v1418_v45, %v3229_v36 }
 0x16a   : > { %4847 = vst [vmem:[#allocation37_spill] sm:$0xff] %v3733_v8  ;;  %4849 = vst [vmem:[#allocation39_spill] sm:$0xff] %v3741_v35  ;;  %2649 = vrot.lane.b32.xlu0 %v2648_v26, %s3020_s7  ;;  %v1850_v27 = vpop.permute.xlu1 %1849  ;;  %v1854_v54 = vpop.permute.xlu0 %1853  ;;  %v1716_v46 = vcombine.high %v3255_v47, %v3257_v48 }
 0x16b   : > { %4851 = vst [vmem:[#allocation41_spill] sm:$0xff] %v3747_v56  ;;  %v1869_v23 = vcombine.low %v1846_v29, %v1854_v54  ;;  %v1870_v52 = vcombine.high %v1846_v29, %v1854_v54  ;;  %v1450_v26 = vcombine.high %v3744_v31, %v3747_v56  ;;  %v1465_v60 = vcombine.low %v1432_v37, %v1448_v14 }
 0x16c   : > { %v1466_v6 = vcombine.high %v1432_v37, %v1448_v14  ;;  %v3775_v48 = vrot.slane %v1716_v46, %v3229_v36 }
 0x16d   : > { %v3767_v15 = vrot.slane %v1869_v23, %v3229_v36  ;;  %v1884_v45 = vrot.slane %v1870_v52, %v3229_v36  ;;  %v3779_v33 = vrot.slane %v1465_v60, %v3487_v10 }
 0x16e   : > { %v1858_v51 = vpop.permute.xlu1 %1857  ;;  %v1166_v20 = vpop.permute.xlu0 %1165 }
 0x16f   : > { %v1885_v22 = vcombine.low %v1850_v27, %v1858_v51  ;;  %v1886_v12 = vcombine.high %v1850_v27, %v1858_v51  ;;  %4852 = vst [vmem:[#allocation42_spill] sm:$0xff] %v3767_v15  ;;  %v1464_v51 = vrot.slane %v1450_v26, %v3487_v10 }
 0x171   : > { %v3771_v29 = vrot.slane %v1885_v22, %v3229_v36  ;;  %v1900_v47 = vrot.slane %v1886_v12, %v3229_v36  ;;  %v3786_v12 = vrot.slane %v1700_v49, %v3229_v36  ;;  %v3789_v22 = vrot.slane %v1466_v6, %v3487_v10 }
 0x172   : > { %v1170_v54 = vpop.permute.xlu1 %1169  ;;  %v1174_v35 = vpop.permute.xlu0 %1173  ;;  %v1732_v49 = vcombine.high %v3292_v62, %v3295_v63  ;;  %v3805_v6 = vcombine.high %v3779_v33, %v4843_v41 }
 0x173   : > { %4853 = vst [vmem:[#allocation43_spill] sm:$0xff] %v3771_v29  ;;  %v1902_v52 = vcombine.high %v3767_v15, %v3771_v29  ;;  %v1917_v23 = vcombine.low %v1884_v45, %v1900_v47  ;;  %v1918_v14 = vcombine.high %v1884_v45, %v1900_v47  ;;  %v1255_v27 = vcombine.low %v1166_v20, %v1174_v35 }
 0x174   : > { %v1256_v37 = vcombine.high %v1166_v20, %v1174_v35  ;;  %v3799_v45 = vcombine.high %v1464_v51, %v4843_v41  ;;  %4855 = vst [vmem:[#allocation45_spill] sm:$0xff] %v3805_v6  ;;  %v1748_v35 = vcombine.high %v3786_v12, %v3775_v48  ;;  %v3821_v63 = vcombine.high %v3789_v22, %v4843_v41 }
 0x175   : > { %v1916_v46 = vrot.slane %v1902_v52, %v3487_v10  ;;  %v3793_v60 = vrot.slane %v1917_v23, %v3487_v10  ;;  %v3796_v26 = vrot.slane %v1918_v14, %v3487_v10  ;;  %v3813_v14 = vrot.slane %v1255_v27, %v3229_v36 }
 0x176   : > { %v1178_v38 = vpop.permute.xlu1 %1177  ;;  %v1164_v8 = vpop.permute.xlu0 %1163  ;;  %4854 = vst [vmem:[#allocation44_spill] sm:$0xff] %v3799_v45  ;;  %4859 = vst [vmem:[#allocation49_spill] sm:$0xff] %v3821_v63  ;;  %v1746_v15 = vrot.slane %v1732_v49, %v3487_v10  ;;  %v3855_v49 = vrot.slane %v1748_v35, %v3487_v10 }
 0x177   : > { %v1271_v20 = vcombine.low %v1170_v54, %v1178_v38  ;;  %v1272_v47 = vcombine.high %v1170_v54, %v1178_v38  ;;  %v2663_v52 = vpack.i.bf16 %v1916_v46, %v1464_v51  ;;  %v3810_v23 = vcombine.high %v1916_v46, %v4843_v41  ;;  %4857 = vst [vmem:[#allocation47_spill] sm:$0xff] %v3813_v14 }
 0x178   : > { %v3817_v56 = vcombine.high %v3793_v60, %v4843_v41  ;;  %v3825_v62 = vcombine.high %v3796_v26, %v4843_v41  ;;  %v3828_v54 = vrot.slane %v1256_v37, %v3229_v36  ;;  %v1648_v46 = vcombine.high %v3322_v11, %v3299_v2 }
 0x179   : > { %4856 = vst [vmem:[#allocation46_spill] sm:$0xff] %v3810_v23  ;;  %v3831_v51 = vrot.slane %v1271_v20, %v3229_v36  ;;  %v3834_v38 = vrot.slane %v1272_v47, %v3229_v36  ;;  %2664 = vrot.lane.b32.xlu0 %v2663_v52, %s3020_s7  ;;  %v1632_v2 = vcombine.high %v3314_v7, %v3283_v59 }
 0x17a   : > { %4858 = vst [vmem:[#allocation48_spill] sm:$0xff] %v3817_v56  ;;  %4860 = vst [vmem:[#allocation50_spill] sm:$0xff] %v3825_v62  ;;  %v1168_v31 = vpop.permute.xlu1 %1167  ;;  %v1172_v29 = vpop.permute.xlu0 %1171  ;;  %v3862_v47 = vrot.slane %v1648_v46, %v3229_v36  ;;  %v3865_v62 = vcombine.high %v1746_v15, %v4843_v41  ;;  %v1664_v59 = vcombine.high %v3354_v28, %v3357_v30 }
 0x17b   : > { %4861 = vst [vmem:[#allocation51_spill] sm:$0xff] %v3831_v51  ;;  %v1288_v52 = vcombine.high %v3813_v14, %v3831_v51  ;;  %v1304_v27 = vcombine.high %v3828_v54, %v3834_v38  ;;  %v1187_v11 = vcombine.low %v1164_v8, %v1172_v29  ;;  %v1188_v37 = vcombine.high %v1164_v8, %v1172_v29 }
 0x17c   : > { %v3873_v29 = vrot.slane %v1632_v2, %v3229_v36  ;;  %v3880_v46 = vcombine.high %v3855_v49, %v4843_v41  ;;  %v1678_v56 = vrot.slane %v1664_v59, %v3487_v10 }
 0x17d   : > { %v1302_v45 = vrot.slane %v1288_v52, %v3487_v10  ;;  %v3859_v20 = vrot.slane %v1304_v27, %v3487_v10  ;;  %v3876_v27 = vrot.slane %v1187_v11, %v3229_v36 }
 0x17e   : > { %v1176_v23 = vpop.permute.xlu1 %1175  ;;  %v2078_v63 = vpop.permute.xlu0 %2077  ;;  %4863 = vst [vmem:[#allocation53_spill] sm:$0xff] %v3880_v46  ;;  %v1679_v30 = vcombine.low %v3873_v29, %v3862_v47 }
 0x17f   : > { %v1203_v7 = vcombine.low %v1168_v31, %v1176_v23  ;;  %v1204_v35 = vcombine.high %v1168_v31, %v1176_v23  ;;  %v2673_v6 = vpack.i.bf16 %v1746_v15, %v1302_v45  ;;  %v3870_v8 = vcombine.high %v1302_v45, %v4843_v41  ;;  %4862 = vst [vmem:[#allocation52_spill] sm:$0xff] %v3876_v27 }
 0x180   : > { %v3884_v52 = vcombine.high %v3859_v20, %v4843_v41  ;;  %v3887_v31 = vrot.slane %v1188_v37, %v3229_v36  ;;  %v2678_v23 = vpack.i.bf16 %v3715_v39, %v3701_v24  ;;  %v3922_v46 = vrot.slane %v1679_v30, %v3487_v10 }
 0x181   : > { %v3890_v15 = vrot.slane %v1203_v7, %v3229_v36  ;;  %v3893_v45 = vrot.slane %v1204_v35, %v3229_v36  ;;  %2674 = vrot.lane.b32.xlu0 %v2673_v6, %s3020_s7  ;;  %v3919_v7 = vcombine.high %v1678_v56, %v4843_v41  ;;  %v1303_v24 = vcombine.low %v3828_v54, %v3834_v38 }
 0x182   : > { %4864 = vst [vmem:[#allocation54_spill] sm:$0xff] %v3884_v52  ;;  %v2082_v2 = vpop.permute.xlu1 %2081  ;;  %v2086_v11 = vpop.permute.xlu0 %2085  ;;  %v1747_v30 = vcombine.low %v3786_v12, %v3775_v48 }
 0x183   : > { %4865 = vst [vmem:[#allocation55_spill] sm:$0xff] %v3890_v15  ;;  %v1220_v35 = vcombine.high %v3876_v27, %v3890_v15  ;;  %v1235_v6 = vcombine.low %v3887_v31, %v3893_v45  ;;  %v2167_v28 = vcombine.low %v2078_v63, %v2086_v11  ;;  %v2168_v54 = vcombine.high %v2078_v63, %v2086_v11 }
 0x184   : > { %v2713_v63 = vpack.i.bf16 %v3796_v26, %v3789_v22  ;;  %v3958_v11 = vrot.slane %v1747_v30, %v3487_v10  ;;  %v1236_v30 = vcombine.high %v3887_v31, %v3893_v45  ;;  %v1680_v31 = vcombine.high %v3873_v29, %v3862_v47 }
 0x185   : > { %2679 = vrot.lane.b32.xlu0 %v2678_v23, %s3021_s8  ;;  %v1234_v59 = vrot.slane %v1220_v35, %v3487_v10  ;;  %v3914_v51 = vrot.slane %v1235_v6, %v3487_v10  ;;  %v3932_v27 = vrot.slane %v2167_v28, %v3229_v36  ;;  %v4868_v29 = vcombine.low %v3568_v32, %v3574_v5 }
 0x186   : > { %v2090_v37 = vpop.permute.xlu1 %2089  ;;  %v3916_v52 = vpop.permute.xlu0 %2075 }
 0x187   : > { %v2183_v39 = vcombine.low %v2082_v2, %v2090_v37  ;;  %v2688_v15 = vpack.i.bf16 %v1678_v56, %v1234_v59  ;;  %v3927_v23 = vcombine.high %v1234_v59, %v4843_v41  ;;  %v2184_v35 = vcombine.high %v2082_v2, %v2090_v37 }
 0x188   : > { %v2708_v6 = vpack.i.bf16 %v3922_v46, %v3914_v51  ;;  %v2693_v37 = vpack.i.bf16 %v3793_v60, %v3779_v33  ;;  %v3948_v59 = vrot.slane %v1303_v24, %v3487_v10  ;;  %v2182_v33 = vrot.slane %v2168_v54, %v3229_v36 }
 0x189   : > { %v3935_v14 = vrot.slane %v2183_v39, %v3229_v36  ;;  %2689 = vrot.lane.b32.xlu1 %v2688_v15, %s3020_s7  ;;  %v2848_v56 = vpack.i.bf16 %v3919_v7, %v3927_v23  ;;  %v2198_v15 = vrot.slane %v2184_v35, %v3229_v36  ;;  %v1697_v23 = vcombine.high %v3922_v46, %v4843_v41 }
 0x18a   : > { %2709 = vrot.lane.b32.xlu0 %v2708_v6, %s3021_s8  ;;  %v2080_v38 = vpop.permute.xlu1 %2079  ;;  %v2084_v2 = vpop.permute.xlu0 %2083  ;;  %v2698_v39 = vpack.i.bf16 %v3958_v11, %v3948_v59 }
 0x18b   : > { %v2199_v28 = vcombine.low %v3932_v27, %v3935_v14  ;;  %v2200_v48 = vcombine.high %v3932_v27, %v3935_v14  ;;  %v2099_v12 = vcombine.low %v3916_v52, %v2084_v2  ;;  %v2215_v35 = vcombine.low %v2182_v33, %v2198_v15 }
 0x18c   : > { %v1321_v14 = vcombine.high %v3948_v59, %v4843_v41 }
 0x18d   : > { %2694 = vrot.lane.b32.xlu1 %v2693_v37, %s3021_s8  ;;  %v3965_v6 = vrot.slane %v2200_v48, %v3487_v10  ;;  %v3968_v22 = vrot.slane %v2099_v12, %v3229_v36  ;;  %v2703_v37 = vpack.i.bf16 %v3718_v21, %v3710_v3  ;;  %v2216_v48 = vcombine.high %v2182_v33, %v2198_v15 }
 0x18e   : > { %2714 = vrot.lane.b32.xlu0 %v2713_v63, %s3022_s17  ;;  %v2088_v60 = vpop.permute.xlu1 %2087  ;;  %v3983_v63 = vrot.slane %v2215_v35, %v3487_v10  ;;  %v4866_v12 = vcombine.low %v3481_v1, %v3484_v4  ;;  %v4867_v3 = vcombine.low %v3279_v57, %v3289_v61  ;;  %v2718_v1 = vpack.i.bf16 %v3855_v49, %v3859_v20 }
 0x18f   : > { %v2115_v24 = vcombine.low %v2080_v38, %v2088_v60  ;;  %v2116_v45 = vcombine.high %v2080_v38, %v2088_v60  ;;  %v4005_v4 = vrot.slane %v1236_v30, %v3487_v10  ;;  %v4008_v15 = vrot.slane %v2216_v48, %v3487_v10 }
 0x190   : > { %v4000_v21 = vrot.slane %v4867_v3, %v3487_v10  ;;  %v4016_v57 = vrot.slane %v4868_v29, %v3487_v10  ;;  %v2100_v61 = vcombine.high %v3916_v52, %v2084_v2  ;;  %v4021_v20 = vrot.slane %v1680_v31, %v3487_v10  ;;  %v4872_v29 = vld [vmem:[#allocation17_spill] sm:$0xff] }
 0x191   : > { %v3971_v26 = vrot.slane %v2115_v24, %v3229_v36  ;;  %2699 = vrot.lane.b32.xlu1 %v2698_v39, %s3021_s8  ;;  %v3989_v24 = vrot.slane %v4866_v12, %v3487_v10  ;;  %v4869_v38 = vcombine.low %v3273_v55, %v3327_v13  ;;  %v2130_v5 = vrot.slane %v2116_v45, %v3229_v36 }
 0x192   : > { %2268 = vrot.lane.b32.xlu0 %v3965_v6, %s3020_s7  ;;  %v1081_v49 = vcombine.high %v4000_v21, %v4843_v41  ;;  %v2723_v2 = vpack.i.bf16 %v4021_v20, %v4005_v4  ;;  %v1969_v33 = vcombine.low %v3684_v50, %v3688_v53  ;;  %v799_v39 = vcombine.high %v4016_v57, %v4843_v41 }
 0x193   : > { %v2131_v54 = vcombine.low %v3968_v22, %v3971_v26  ;;  %v637_v47 = vcombine.high %v3989_v24, %v4843_v41  ;;  %v4031_v32 = vrot.slane %v4869_v38, %v3487_v10  ;;  %v2132_v52 = vcombine.high %v3968_v22, %v3971_v26 }
 0x194   : > { %v2114_v35 = vrot.slane %v2100_v61, %v3229_v36  ;;  %v1517_v55 = vcombine.low %v3643_v0, %v3624_v42  ;;  %v4053_v53 = vrot.slane %v1969_v33, %v3487_v10  ;;  %v570_v36 = vcombine.high %v3516_v44, %v4843_v41  ;;  %v4873_v61 = vld [vmem:[#allocation18_spill] sm:$0xff] }
 0x195   : > { %2704 = vrot.lane.b32.xlu1 %v2703_v37, %s3022_s17  ;;  %v2728_v60 = vpack.i.bf16 %v1081_v49, %v637_v47  ;;  %v324_v13 = vcombine.high %v4031_v32, %v4843_v41  ;;  %v4050_v50 = vrot.slane %v2132_v52, %v3487_v10  ;;  %v1014_v42 = vcombine.high %v3522_v58, %v4843_v41  ;;  %v4875_v52 = vld [vmem:[#allocation9_spill] sm:$0xff] }
 0x196   : > { %2276 = vrot.lane.b32.xlu0 %v3983_v63, %s3021_s8  ;;  %v2147_v30 = vcombine.low %v2114_v35, %v2130_v5  ;;  %v4063_v0 = vrot.slane %v1517_v55, %v3487_v10  ;;  %v2148_v48 = vcombine.high %v2114_v35, %v2130_v5  ;;  %v4870_v31 = vcombine.low %v3505_v9, %v3508_v25 }
 0x197   : > { %v2748_v37 = vpack.i.bf16 %v799_v39, %v324_v13  ;;  %v2753_v3 = vpack.i.bf16 %v1014_v42, %v570_v36  ;;  %v2001_v45 = vcombine.high %v4053_v53, %v4843_v41  ;;  %v4871_v58 = vcombine.low %v3341_v18, %v3344_v19  ;;  %v4878_v36 = vld [vmem:[#allocation15_spill] sm:$0xff] }
 0x198   : > { %v4066_v12 = vrot.slane %v2147_v30, %v3487_v10  ;;  %v4072_v44 = vrot.slane %v4870_v31, %v3487_v10  ;;  %v1549_v25 = vcombine.high %v4063_v0, %v4843_v41  ;;  %v4088_v9 = vrot.slane %v2148_v48, %v3487_v10 }
 0x199   : > { %2719 = vrot.lane.b32.xlu1 %v2718_v1, %s3022_s17  ;;  %v4082_v1 = vrot.slane %v4871_v58, %v3487_v10  ;;  %v4874_v49 = vcombine.low %v4872_v29, %v4873_v61  ;;  %v869_v19 = vcombine.high %v3649_v34, %v4843_v41  ;;  %v394_v39 = vcombine.high %v3665_v43, %v4843_v41  ;;  %v4882_v29 = vld [vmem:[#allocation26_spill] sm:$0xff] }
 0x19a   : > { %2284 = vrot.lane.b32.xlu0 %v4008_v15, %s3022_s17  ;;  %v569_v47 = vcombine.high %v4072_v44, %v4843_v41  ;;  %v2768_v18 = vpack.i.bf16 %v2001_v45, %v1549_v25  ;;  %v640_v13 = vcombine.high %v3681_v17, %v4843_v41  ;;  %v638_v42 = vcombine.high %v4878_v36, %v4843_v41  ;;  %v4879_v17 = vld [vmem:[#allocation16_spill] sm:$0xff]  ;;  %v4880_v45 = vld [vmem:[#allocation23_spill] sm:$0xff] }
 0x19b   : > { %v4096_v38 = vrot.slane %v4874_v49, %v3487_v10  ;;  %v1013_v5 = vcombine.high %v4082_v1, %v4843_v41  ;;  %v2788_v55 = vpack.i.bf16 %v869_v19, %v394_v39  ;;  %v801_v48 = vcombine.high %v3595_v40, %v4843_v41  ;;  %v4881_v25 = vld [vmem:[#allocation20_spill] sm:$0xff]  ;;  %v4883_v49 = vld [vmem:[#allocation19_spill] sm:$0xff]  ;;  %v4886_v39 = vld [vmem:[#allocation30_spill] sm:$0xff] }
 0x19c   : > { %v326_v58 = vcombine.high %v4880_v45, %v4843_v41  ;;  %v572_v61 = vcombine.high %v4882_v29, %v4843_v41  ;;  %v4884_v19 = vld [vmem:[#allocation28_spill] sm:$0xff]  ;;  %v1254_v59 = vcombine.high %v4005_v4, %v4843_v41  ;;  %v4308_v4 = vrot.slane %v2131_v54, %v3487_v10 }
 0x19d   : > { %2724 = vrot.lane.b32.xlu1 %v2723_v2, %s3022_s17  ;;  %v4876_v2 = vld [vmem:[#allocation10_spill] sm:$0xff]  ;;  %v2733_v35 = vpack.i.bf16 %v1013_v5, %v569_v47  ;;  %v867_v34 = vcombine.high %v4096_v38, %v4843_v41  ;;  %v868_v47 = vcombine.high %v4881_v25, %v4843_v41  ;;  %v1016_v5 = vcombine.high %v4884_v19, %v4843_v41  ;;  %v4889_v36 = vld [vmem:[#allocation24_spill] sm:$0xff] }
 0x19e   : > { %2729 = vrot.lane.b32.xlu0 %v2728_v60, %s3023_s19  ;;  %v4877_v33 = vcombine.low %v4875_v52, %v4876_v2  ;;  %v2808_v40 = vpack.i.bf16 %v801_v48, %v326_v58  ;;  %v4885_v2 = vld [vmem:[#allocation21_spill] sm:$0xff]  ;;  %v4892_v58 = vld [vmem:[#allocation42_spill] sm:$0xff]  ;;  %4935 = vst [vmem:[#allocation17_spill] sm:$0xff] %v4308_v4  ;;  %v2164_v22 = vcombine.high %v4050_v50, %v4843_v41  ;;  %v3027_v54 = vmov 0  }
 0x19f   : > { %2888 = vset.pattern.permute.xlu0 %v3027_v54 }
 0x1a0   : > { %v4108_v60 = vrot.slane %v4877_v33, %v3487_v10  ;;  %v639_v33 = vcombine.high %v4885_v2, %v4843_v41  ;;  %v4900_v2 = vld [vmem:[#allocation47_spill] sm:$0xff] }
 0x1a1   : > { %2240 = vrot.lane.b32.xlu1 %v4050_v50, %s3020_s7  ;;  %s4705_s7 = scalar_lea.hbm %s4752_s3, %s2537_s10 }
 0x1a2   : > { %2749 = vrot.lane.b32.xlu0 %v2748_v37, %s3023_s19  ;;  %v392_v30 = vcombine.high %v4108_v60, %v4843_v41  ;;  %v1084_v37 = vcombine.high %v3697_v16, %v4843_v41 }
 0x1a4   : > { %v2738_v43 = vpack.i.bf16 %v867_v34, %v392_v30  ;;  %v2793_v31 = vpack.i.bf16 %v1084_v37, %v640_v13  ;;  %v2813_v34 = vpack.i.bf16 %v1016_v5, %v572_v61  ;;  %v4888_v30 = vld [vmem:[#allocation31_spill] sm:$0xff]  ;;  %v4895_v61 = vld [vmem:[#allocation29_spill] sm:$0xff] }
 0x1a5   : > { %2248 = vrot.lane.b32.xlu1 %v4066_v12, %s3021_s8  ;;  %v395_v37 = vcombine.high %v4888_v30, %v4843_v41  ;;  %v4903_v30 = vld [vmem:[#allocation11_spill] sm:$0xff]  ;;  %s2943_s8 = scalar_lea.vmem %s4707_s23, 256 }
 0x1a6   : > { %2754 = vrot.lane.b32.xlu0 %v2753_v3, %s3024_s20  ;;  %v1082_v3 = vcombine.high %v4879_v17, %v4843_v41  ;;  %p2944_p6 = scmp.ne.s32.totalorder %s4707_s23, %s2943_s8 }
 0x1a8   : > { %v2743_v16 = vpack.i.bf16 %v1082_v3, %v638_v42  ;;  %v800_v42 = vcombine.high %v4889_v36, %v4843_v41  ;;  %v4891_v3 = vld [vmem:[#allocation27_spill] sm:$0xff]  ;;  %p2945_p12 = pnand %p2944_p6, %p4957_p11 }
 0x1a9   : > { %2256 = vrot.lane.b32.xlu1 %v4088_v9, %s3022_s17  ;;  %v571_v45 = vcombine.high %v4891_v3, %v4843_v41  ;;  %v4907_v36 = vld [vmem:[#allocation35_spill] sm:$0xff]  ;;  %v4909_v3 = vld [vmem:[#allocation52_spill] sm:$0xff]  ;;  %s3028_s17 = smov [#allocation6]  }
 0x1aa   : > { %2769 = vrot.lane.b32.xlu0 %v2768_v18, %s3023_s19  ;;  %v393_v18 = vcombine.high %v4883_v49, %v4843_v41  ;;  %v4896_v49 = vld [vmem:[#allocation40_spill] sm:$0xff]  ;;  %p2946_p13 = pneg %p2945_p12 }
 0x1ac   : > { %v2758_v52 = vpack.i.bf16 %v868_v47, %v393_v18  ;;  %v4897_v18 = vld [vmem:[#allocation41_spill] sm:$0xff] }
 0x1ad   : > { %2734 = vrot.lane.b32.xlu1 %v2733_v35, %s3023_s19  ;;  %v870_v35 = vcombine.high %v4886_v39, %v4843_v41  ;;  %v4898_v19 = vcombine.low %v4896_v49, %v4897_v18  ;;  %v4913_v49 = vld [vmem:[#allocation14_spill] sm:$0xff] }
 0x1ae   : > { %2789 = vrot.lane.b32.xlu0 %v2788_v55, %s3025_s22  ;;  %v4887_v55 = vld [vmem:[#allocation22_spill] sm:$0xff] }
 0x1af   : > { %v1083_v13 = vcombine.high %v4887_v55, %v4843_v41  ;;  %v2828_v48 = vpack.i.bf16 %v870_v35, %v395_v37  ;;  %v4173_v5 = vrot.slane %v4898_v19, %v3487_v10  ;;  %v4904_v37 = vld [vmem:[#allocation12_spill] sm:$0xff]  ;;  %v4916_v19 = vld [vmem:[#allocation45_spill] sm:$0xff] }
 0x1b1   : > { %2739 = vrot.lane.b32.xlu1 %v2738_v43, %s3023_s19  ;;  %v2763_v43 = vpack.i.bf16 %v1083_v13, %v639_v33  ;;  %v4901_v33 = vld [vmem:[#allocation51_spill] sm:$0xff]  ;;  %v1481_v13 = vcombine.high %v4173_v5, %v4843_v41 }
 0x1b2   : > { %2794 = vrot.lane.b32.xlu0 %v2793_v31, %s3026_s26  ;;  %v4890_v31 = vld [vmem:[#allocation25_spill] sm:$0xff]  ;;  %v4902_v39 = vcombine.low %v4900_v2, %v4901_v33 }
 0x1b3   : > { %v325_v17 = vcombine.high %v4890_v31, %v4843_v41 }
 0x1b4   : > { %v4184_v35 = vrot.slane %v4902_v39, %v3487_v10  ;;  %v4918_v39 = vld [vmem:[#allocation36_spill] sm:$0xff] }
 0x1b5   : > { %2744 = vrot.lane.b32.xlu1 %v2743_v16, %s3024_s20  ;;  %v4893_v16 = vld [vmem:[#allocation43_spill] sm:$0xff]  ;;  %v2773_v29 = vpack.i.bf16 %v800_v42, %v325_v17 }
 0x1b6   : > { %2809 = vrot.lane.b32.xlu0 %v2808_v40, %s3025_s22  ;;  %v4894_v25 = vcombine.low %v4892_v58, %v4893_v16  ;;  %v1015_v40 = vcombine.high %v4895_v61, %v4843_v41  ;;  %v1319_v31 = vcombine.high %v4184_v35, %v4843_v41  ;;  %v1253_v61 = vcombine.high %v3914_v51, %v4843_v41 }
 0x1b8   : > { %v4165_v47 = vrot.slane %v4894_v25, %v3487_v10  ;;  %v4216_v25 = vpop.permute.xlu0 %2609  ;;  %v2868_v33 = vpack.i.bf16 %v1697_v23, %v1253_v61  ;;  %v1765_v23 = vcombine.high %v3958_v11, %v4843_v41  ;;  %v2233_v11 = vcombine.high %v3983_v63, %v4843_v41 }
 0x1b9   : > { %2759 = vrot.lane.b32.xlu1 %v2758_v52, %s3024_s20  ;;  %v4899_v52 = vpack.i.bf16 %v3865_v62, %v3870_v8  ;;  %v4905_v62 = vcombine.low %v4903_v30, %v4904_v37  ;;  %v4921_v37 = vld [vmem:[#allocation50_spill] sm:$0xff] }
 0x1ba   : > { %2814 = vrot.lane.b32.xlu0 %v2813_v34, %s3026_s26  ;;  %v2778_v34 = vpack.i.bf16 %v1015_v40, %v571_v45  ;;  %v1933_v55 = vcombine.high %v4165_v47, %v4843_v41  ;;  %v4910_v45 = vld [vmem:[#allocation55_spill] sm:$0xff]  ;;  %v4912_v40 = vld [vmem:[#allocation13_spill] sm:$0xff] }
 0x1bb   : > { %v4195_v8 = vrot.slane %v4905_v62, %v3487_v10  ;;  %v4911_v58 = vcombine.low %v4909_v3, %v4910_v45  ;;  %v4914_v18 = vcombine.low %v4912_v40, %v4913_v49  ;;  %v4922_v62 = vld [vmem:[#allocation49_spill] sm:$0xff]  ;;  %v4930_v49 = vld [vmem:[#allocation54_spill] sm:$0xff] }
 0x1bc   : > { %v4233_v2 = vpop.permute.xlu0 %2614  ;;  %v4929_v40 = vld [vmem:[#allocation53_spill] sm:$0xff] }
 0x1bd   : > { %2764 = vrot.lane.b32.xlu1 %v2763_v43, %s3025_s22  ;;  %v4906_v43 = vld [vmem:[#allocation37_spill] sm:$0xff]  ;;  %v1763_v17 = vcombine.high %v4195_v8, %v4843_v41  ;;  %v4214_v16 = vrot.slane %v4911_v58, %v3487_v10  ;;  %v4225_v7 = vrot.slane %v4914_v18, %v3487_v10  ;;  %v4926_v58 = vld [vmem:[#allocation46_spill] sm:$0xff]  ;;  %v4931_v18 = vpack.i.bf16 %v4929_v40, %v4930_v49 }
 0x1be   : > { %2829 = vrot.lane.b32.xlu0 %v2828_v48, %s3026_s26  ;;  %v4908_v42 = vpack.i.bf16 %v4906_v43, %v4907_v36  ;;  %v2783_v48 = vpack.i.bf16 %v1933_v55, %v1481_v13  ;;  %v4923_v43 = vpack.i.bf16 %v4921_v37, %v4922_v62  ;;  %v4924_v36 = vld [vmem:[#allocation32_spill] sm:$0xff]  ;;  %v2163_v62 = vcombine.high %v4308_v4, %v4843_v41 }
 0x1bf   : > { %v1251_v51 = vcombine.high %v4214_v16, %v4843_v41  ;;  %v1695_v13 = vcombine.high %v4225_v7, %v4843_v41 }
 0x1c1   : > { %2774 = vrot.lane.b32.xlu1 %v2773_v29, %s3024_s20  ;;  %v2798_v29 = vpack.i.bf16 %v1763_v17, %v1319_v31  ;;  %v2818_v30 = vpack.i.bf16 %v1695_v13, %v1251_v51  ;;  %v4925_v31 = vld [vmem:[#allocation33_spill] sm:$0xff]  ;;  %v2232_v51 = vcombine.high %v3965_v6, %v4843_v41  ;;  %v4933_v6 = vld [vmem:[#allocation38_spill] sm:$0xff] }
 0x1c2   : > { %2834 = vrot.lane.b32.xlu0 %v4899_v52, %s3024_s20  ;;  %v327_v17 = vcombine.high %v4925_v31, %v4843_v41 }
 0x1c3   : > { %v4261_v3 = vpop.permute.xlu1 %2619 }
 0x1c5   : > { %2779 = vrot.lane.b32.xlu1 %v2778_v34, %s3025_s22  ;;  %v4919_v34 = vld [vmem:[#allocation34_spill] sm:$0xff] }
 0x1c6   : > { %2839 = vrot.lane.b32.xlu0 %v4908_v42, %s3025_s22  ;;  %v4920_v55 = vpack.i.bf16 %v4918_v39, %v4919_v34  ;;  %v802_v42 = vcombine.high %v4924_v36, %v4843_v41 }
 0x1c8   : > { %v2843_v27 = vpack.i.bf16 %v802_v42, %v327_v17  ;;  %v2166_v42 = vcombine.high %v4088_v9, %v4843_v41 }
 0x1c9   : > { %2784 = vrot.lane.b32.xlu1 %v2783_v48, %s3023_s19  ;;  %v4257_v48 = vrot.slane %v2199_v28, %v3487_v10  ;;  %v2339_v10 = vld [vmem:[%s4751_s2] sm:$0xff] }
 0x1ca   : > { %2849 = vrot.lane.b32.xlu0 %v2848_v56, %s3024_s20  ;;  %v4915_v56 = vld [vmem:[#allocation48_spill] sm:$0xff] }
 0x1cb   : > { %v4917_v52 = vpack.i.bf16 %v4915_v56, %v4916_v19  ;;  %v2231_v28 = vcombine.high %v4257_v48, %v4843_v41  ;;  %v4281_v56 = vpop.permute.xlu1 %2624 }
 0x1cc   : > { %v4244_v46 = vpop.permute.xlu0 %2629 }
 0x1cd   : > { %2799 = vrot.lane.b32.xlu1 %v2798_v29, %s3023_s19  ;;  %v4927_v29 = vld [vmem:[#allocation44_spill] sm:$0xff] }
 0x1ce   : > { %2854 = vrot.lane.b32.xlu0 %v4917_v52, %s3025_s22  ;;  %v4928_v61 = vpack.i.bf16 %v4926_v58, %v4927_v29  ;;  %v2858_v52 = vpack.i.bf16 %v1765_v23, %v1321_v14 }
 0x1cf   : > { %v4295_v39 = vpop.permute.xlu1 %2654 }
 0x1d0   : > { %v4263_v45 = vpop.permute.xlu0 %2634 }
 0x1d1   : > { %2804 = vrot.lane.b32.xlu1 %v4920_v55, %s3024_s20  ;;  %v4932_v55 = vld [vmem:[#allocation39_spill] sm:$0xff] }
 0x1d2   : > { %2869 = vrot.lane.b32.xlu0 %v2868_v33, %s3025_s22  ;;  %v1698_v33 = vcombine.high %v4021_v20, %v4843_v41  ;;  %v4934_v13 = vpack.i.bf16 %v4932_v55, %v4933_v6  ;;  %v2234_v20 = vcombine.high %v4008_v15, %v4843_v41  ;;  %v2611_v55 = vunpack.i.l.bf16 %v4216_v25 }
 0x1d3   : > { %v2617_v6 = vunpack.i.h.bf16 %v4233_v2 }
 0x1d4   : > { %v4283_v19 = vpop.permute.xlu0 %2639  ;;  %v2883_v63 = vpack.i.bf16 %v1698_v33, %v1254_v59  ;;  %v2612_v33 = vunpack.i.h.bf16 %v4216_v25 }
 0x1d5   : > { %2819 = vrot.lane.b32.xlu1 %v2818_v30, %s3023_s19  ;;  %v4314_v30 = vpop.permute.xlu1 %2659 }
 0x1d6   : > { %2874 = vrot.lane.b32.xlu0 %v4923_v43, %s3026_s26  ;;  %v2165_v43 = vcombine.high %v4066_v12, %v4843_v41 }
 0x1d8   : > { %v4297_v34 = vpop.permute.xlu0 %2644 }
 0x1d9   : > { %2824 = vrot.lane.b32.xlu1 %v4928_v61, %s3024_s20  ;;  %v4328_v15 = vpop.permute.xlu1 %2669 }
 0x1da   : > { %2879 = vrot.lane.b32.xlu0 %v4931_v18, %s3026_s26 }
 0x1dc   : > { %v4316_v37 = vpop.permute.xlu0 %2649 }
 0x1dd   : > { %2844 = vrot.lane.b32.xlu1 %v2843_v27, %s3026_s26  ;;  %v4338_v50 = vpop.permute.xlu1 %2684 }
 0x1de   : > { %2264 = vrot.lane.b32.xlu0 %v2231_v28, %s3023_s19 }
 0x1e1   : > { %2859 = vrot.lane.b32.xlu1 %v2858_v52, %s3025_s22 }
 0x1e2   : > { %2272 = vrot.lane.b32.xlu0 %v2232_v51, %s3024_s20 }
 0x1e5   : > { %2864 = vrot.lane.b32.xlu1 %v4934_v13, %s3026_s26  ;;  %v2616_v13 = vunpack.i.l.bf16 %v4233_v2 }
 0x1e6   : > { %2280 = vrot.lane.b32.xlu0 %v2233_v11, %s3025_s22 }
 0x1e9   : > { %2884 = vrot.lane.b32.xlu1 %v2883_v63, %s3026_s26 }
 0x1ea   : > { %2288 = vrot.lane.b32.xlu0 %v2234_v20, %s3026_s26 }
 0x1eb   : > { %v4326_v26 = vpop.permute.xlu0 %2664 }
 0x1ed   : > { %2236 = vrot.lane.b32.xlu1 %v2163_v62, %s3023_s19  ;;  %v2637_v62 = vunpack.i.h.bf16 %v4263_v45  ;;  %s2947_s19 = sshll.u32 %s3028_s17, 4  ;;  %s2948_s19 = int_to_ptr.vmem [resolvable:$false] %s2947_s19 }
 0x1ee   : > { %2342 = vperm.xlu0 %2888, %v2339_v10   ;;  %v2627_v10 = vunpack.i.h.bf16 %v4281_v56  ;;  %p2950_p8 = scmp.lt.s32.totalorder %s4707_s23, %s2948_s19 }
 0x1f1   : > { %2244 = vrot.lane.b32.xlu1 %v2164_v22, %s3024_s20  ;;  %s2949_s20 = scalar_lea.vmem %s2948_s19, 512 }
 0x1f2   : > { %p2951_p10 = scmp.lt.s32.totalorder %s2949_s20, %s2943_s8 }
 0x1f3   : > { %v4333_v36 = vpop.permute.xlu0 %2674 }
 0x1f4   : > { %p2952_p0 = por %p2951_p10, %p2950_p8 }
 0x1f5   : > { %2252 = vrot.lane.b32.xlu1 %v2165_v43, %s3025_s22 }
 0x1f6   : > { %p2953_p2 = pnand %p2952_p0, %p2946_p13 }
 0x1f7   : > { %v4340_v31 = vpop.permute.xlu0 %2679 }
 0x1f9   : > { %2260 = vrot.lane.b32.xlu1 %v2166_v42, %s3026_s26  ;;  %v2626_v42 = vunpack.i.l.bf16 %v4281_v56 }
 0x1fb   : > { %v4343_v17 = vpop.permute.xlu1 %2689 }
 0x1fc   : > { %v4345_v58 = vpop.permute.xlu0 %2709 }
 0x1ff   : > { %v4347_v29 = vpop.permute.xlu1 %2694 }
 0x200   : > { %v4349_v12 = vpop.permute.xlu0 %2714 }
 0x203   : > { %v4351_v61 = vpop.permute.xlu1 %2699 }
 0x204   : > { %v4353_v40 = vpop.permute.xlu0 %2268 }
 0x205   : > { %4936 = vst [vmem:[#allocation18_spill] sm:$0xff] %v4353_v40 }
 0x207   : > { %v4355_v49 = vpop.permute.xlu1 %2704 }
 0x208   : > { %v4357_v41 = vpop.permute.xlu0 %2276 }
 0x209   : > { %4937 = vst [vmem:[#allocation9_spill] sm:$0xff] %v4357_v41 }
 0x20b   : > { %v4359_v9 = vpop.permute.xlu1 %2719 }
 0x20c   : > { %v4361_v18 = vpop.permute.xlu0 %2284 }
 0x20d   : > { %4938 = vst [vmem:[#allocation10_spill] sm:$0xff] %v4361_v18 }
 0x20f   : > { %v4363_v14 = vpop.permute.xlu1 %2724 }
 0x210   : > { %v2730_v27 = vpop.permute.xlu0 %2729 }
 0x211   : > { %v2732_v25 = vunpack.i.h.bf16 %v2730_v27 }
 0x213   : > { %v4365_v28 = vpop.permute.xlu1 %2240 }
 0x214   : > { %4939 = vst [vmem:[#allocation15_spill] sm:$0xff] %v4365_v28  ;;  %v4367_v23 = vpop.permute.xlu0 %2749 }
 0x217   : > { %v4369_v52 = vpop.permute.xlu1 %2248 }
 0x218   : > { %4940 = vst [vmem:[#allocation16_spill] sm:$0xff] %v4369_v52  ;;  %v2755_v51 = vpop.permute.xlu0 %2754  ;;  %v2731_v52 = vunpack.i.l.bf16 %v2730_v27  ;;  %v2647_v27 = vunpack.i.h.bf16 %v4297_v34 }
 0x219   : > { %v2757_v28 = vunpack.i.h.bf16 %v2755_v51  ;;  %v2756_v18 = vunpack.i.l.bf16 %v2755_v51 }
 0x21b   : > { %v4371_v59 = vpop.permute.xlu1 %2256 }
 0x21c   : > { %4941 = vst [vmem:[#allocation23_spill] sm:$0xff] %v4371_v59  ;;  %v4373_v11 = vpop.permute.xlu0 %2769  ;;  %v2686_v59 = vunpack.i.l.bf16 %v4338_v50 }
 0x21f   : > { %v2735_v20 = vpop.permute.xlu1 %2734 }
 0x220   : > { %v2737_v22 = vunpack.i.h.bf16 %v2735_v20  ;;  %v2736_v54 = vunpack.i.l.bf16 %v2735_v20  ;;  %v4382_v43 = vpop.permute.xlu0 %2789  ;;  %v2636_v20 = vunpack.i.l.bf16 %v4263_v45 }
 0x222   : > { %v1141_v2 = vsel %vm452_vm3, %v4082_v1, %v2737_v22  ;;  %v697_v63 = vsel %vm452_vm3, %v4072_v44, %v2736_v54  ;;  %v2631_v44 = vunpack.i.l.bf16 %v4244_v46 }
 0x223   : > { %v1142_v4 = vsel %vm454_vm4, %v1141_v2, %v2617_v6  ;;  %v698_v56 = vsel %vm454_vm4, %v697_v63, %v2616_v13  ;;  %v2740_v41 = vpop.permute.xlu1 %2739  ;;  %v1148_v13 = vsel %vm452_vm3, %v4000_v21, %v2732_v25  ;;  %v704_v63 = vsel %vm452_vm3, %v3989_v24, %v2731_v52 }
 0x224   : > { %v4396_v51 = vpop.permute.xlu0 %2794  ;;  %v699_v1 = vsel %vm456_vm5, %v698_v56, %v2756_v18  ;;  %v1143_v22 = vsel %vm456_vm5, %v1142_v4, %v2757_v28  ;;  %v2742_v18 = vunpack.i.h.bf16 %v2740_v41  ;;  %v2741_v2 = vunpack.i.l.bf16 %v2740_v41 }
 0x225   : > { %v4403_v45 = vsel %vm458_vm6, %v699_v1, %v2636_v20  ;;  %v4406_v6 = vsel %vm458_vm6, %v1143_v22, %v2637_v62  ;;  %v2672_v28 = vunpack.i.h.bf16 %v4328_v15  ;;  %v2671_v56 = vunpack.i.l.bf16 %v4328_v15 }
 0x226   : > { %v2642_v20 = vunpack.i.h.bf16 %v4283_v19  ;;  %v2641_v62 = vunpack.i.l.bf16 %v4283_v19  ;;  %v2752_v24 = vunpack.i.h.bf16 %v4367_v23  ;;  %v2751_v41 = vunpack.i.l.bf16 %v4367_v23 }
 0x227   : > { %v2745_v1 = vpop.permute.xlu1 %2744  ;;  %v705_v52 = vsel %vm454_vm4, %v704_v63, %v2611_v55  ;;  %v1149_v15 = vsel %vm454_vm4, %v1148_v13, %v2612_v33  ;;  %v934_v4 = vsel %vm452_vm3, %v4096_v38, %v2742_v18  ;;  %v466_v19 = vsel %vm452_vm3, %v4108_v60, %v2741_v2 }
 0x228   : > { %v2747_v54 = vunpack.i.h.bf16 %v2745_v1  ;;  %v2746_v21 = vunpack.i.l.bf16 %v2745_v1  ;;  %v4418_v25 = vpop.permute.xlu0 %2809  ;;  %v2646_v33 = vunpack.i.l.bf16 %v4297_v34  ;;  %v2652_v38 = vunpack.i.h.bf16 %v4316_v37 }
 0x229   : > { %v453_v18 = vsel %vm452_vm3, %v4031_v32, %v2751_v41  ;;  %v4943_v2 = vunpack.i.h.bf16 %v4261_v3  ;;  %v2667_v32 = vunpack.i.h.bf16 %v4326_v26 }
 0x22a   : > { %v706_v22 = vsel %vm456_vm5, %v705_v52, %v2746_v21  ;;  %v1150_v1 = vsel %vm456_vm5, %v1149_v15, %v2747_v54  ;;  %v927_v54 = vsel %vm452_vm3, %v4016_v57, %v2752_v24  ;;  %v2651_v57 = vunpack.i.l.bf16 %v4316_v37 }
 0x22b   : > { %v2760_v40 = vpop.permute.xlu1 %2759  ;;  %v707_v23 = vsel %vm458_vm6, %v706_v22, %v2626_v42  ;;  %v1151_v55 = vsel %vm458_vm6, %v1150_v1, %v2627_v10  ;;  %v4942_v42 = vunpack.i.l.bf16 %v4261_v3  ;;  %v935_v34 = vsel %vm454_vm4, %v934_v4, %v4943_v2 }
 0x22c   : > { %v2762_v13 = vunpack.i.h.bf16 %v2760_v40  ;;  %v2761_v60 = vunpack.i.l.bf16 %v2760_v40  ;;  %v4436_v63 = vpop.permute.xlu0 %2814  ;;  %v2792_v22 = vunpack.i.h.bf16 %v4382_v43  ;;  %v2791_v40 = vunpack.i.l.bf16 %v4382_v43 }
 0x22d   : > { %v467_v10 = vsel %vm454_vm4, %v466_v19, %v4942_v42  ;;  %v455_v42 = vsel %vm454_vm4, %v453_v18, %v2631_v44 }
 0x22e   : > { %v468_v21 = vsel %vm456_vm5, %v467_v10, %v2761_v60  ;;  %v936_v52 = vsel %vm456_vm5, %v935_v34, %v2762_v13  ;;  %v2797_v60 = vunpack.i.h.bf16 %v4396_v51  ;;  %v2796_v13 = vunpack.i.l.bf16 %v4396_v51 }
 0x22f   : > { %v469_v24 = vsel %vm458_vm6, %v468_v21, %v2641_v62  ;;  %v937_v41 = vsel %vm458_vm6, %v936_v52, %v2642_v20  ;;  %v2765_v15 = vpop.permute.xlu1 %2764  ;;  %v4944_v10 = vunpack.i.h.bf16 %v4244_v46 }
 0x230   : > { %v2767_v3 = vunpack.i.h.bf16 %v2765_v15  ;;  %v2766_v19 = vunpack.i.l.bf16 %v2765_v15  ;;  %v2830_v4 = vpop.permute.xlu0 %2829  ;;  %v470_v1 = vsel %vm460_vm7, %v469_v24, %v2791_v40  ;;  %v938_v43 = vsel %vm460_vm7, %v937_v41, %v2792_v22 }
 0x231   : > { %v928_v62 = vsel %vm454_vm4, %v927_v54, %v4944_v10  ;;  %v2832_v34 = vunpack.i.h.bf16 %v2830_v4  ;;  %v2831_v21 = vunpack.i.l.bf16 %v2830_v4  ;;  %v471_v40 = vsel %vm462_vm8, %v470_v1, %v2671_v56 }
 0x232   : > { %v708_v20 = vsel %vm460_vm7, %v707_v23, %v2766_v19  ;;  %v1152_v2 = vsel %vm460_vm7, %v1151_v55, %v2767_v3  ;;  %v939_v24 = vsel %vm462_vm8, %v938_v43, %v2672_v28  ;;  %v2812_v55 = vunpack.i.h.bf16 %v4418_v25 }
 0x233   : > { %v2775_v52 = vpop.permute.xlu1 %2774  ;;  %v709_v22 = vsel %vm462_vm8, %v708_v20, %v2646_v33  ;;  %v1153_v51 = vsel %vm462_vm8, %v1152_v2, %v2647_v27  ;;  %v2811_v41 = vunpack.i.l.bf16 %v4418_v25  ;;  %v472_v27 = vsel %vm464_vm9, %v471_v40, %v2831_v21 }
 0x234   : > { %v2777_v44 = vunpack.i.h.bf16 %v2775_v52  ;;  %v2776_v18 = vunpack.i.l.bf16 %v2775_v52  ;;  %v4470_v46 = vpop.permute.xlu0 %2834  ;;  %v710_v54 = vsel %vm464_vm9, %v709_v22, %v2796_v13  ;;  %v1154_v23 = vsel %vm464_vm9, %v1153_v51, %v2797_v60 }
 0x235   : > { %v2308_v15 = vrot.slane %v710_v54, 4  ;;  %v2314_v56 = vrot.slane %v1154_v23, 4  ;;  %v940_v3 = vsel %vm464_vm9, %v939_v24, %v2832_v34  ;;  %v4945_v19 = vunpack.i.l.bf16 %v4295_v39 }
 0x236   : > { %v457_v33 = vsel %vm456_vm5, %v455_v42, %v2776_v18  ;;  %v929_v28 = vsel %vm456_vm5, %v928_v62, %v2777_v44  ;;  %v4946_v1 = vunpack.i.h.bf16 %v4295_v39  ;;  %v2666_v34 = vunpack.i.l.bf16 %v4326_v26 }
 0x237   : > { %v459_v4 = vsel %vm458_vm6, %v457_v33, %v4945_v19  ;;  %v2780_v60 = vpop.permute.xlu1 %2779  ;;  %v2331_v25 = vsel %vm2329_vm10, %v472_v27, %v2308_v15  ;;  %v2333_v13 = vsel %vm2329_vm10, %v940_v3, %v2314_v56  ;;  %v2772_v21 = vunpack.i.h.bf16 %v4373_v11 }
 0x238   : > { %v930_v43 = vsel %vm458_vm6, %v929_v28, %v4946_v1  ;;  %v2782_v42 = vunpack.i.h.bf16 %v2780_v60  ;;  %v2781_v10 = vunpack.i.l.bf16 %v2780_v60  ;;  %v4488_v62 = vpop.permute.xlu0 %2839  ;;  %v2538_v20 = vpack.c.bf16 %v2333_v13, %v2331_v25 }
 0x239   : > { %v461_v2 = vsel %vm460_vm7, %v459_v4, %v2811_v41  ;;  %v931_v52 = vsel %vm460_vm7, %v930_v43, %v2812_v55  ;;  %v2771_v40 = vunpack.i.l.bf16 %v4373_v11  ;;  %v4947_v51 = vunpack.i.h.bf16 %v4338_v50 }
 0x23a   : > { %v4496_v39 = vsel %vm462_vm8, %v461_v2, %v2686_v59  ;;  %v701_v22 = vsel %vm460_vm7, %v4403_v45, %v2781_v10  ;;  %v1145_v24 = vsel %vm460_vm7, %v4406_v6, %v2782_v42  ;;  %2539 = vmatprep.subr.bf16.mxu0 %v2538_v20  ;;  %v2677_v18 = vunpack.i.h.bf16 %v4333_v36 }
 0x23b   : > { %v4507_v44 = vsel %vm462_vm8, %v931_v52, %v4947_v51  ;;  %v2676_v59 = vunpack.i.l.bf16 %v4333_v36  ;;  %v4948_v54 = vunpack.i.l.bf16 %v4314_v30  ;;  %v4949_v23 = vunpack.i.h.bf16 %v4314_v30  ;;  %v2785_v55 = vpop.permute.xlu1 %2784 }
 0x23c   : > { %v2682_v6 = vunpack.i.h.bf16 %v4340_v31  ;;  %v2681_v50 = vunpack.i.l.bf16 %v4340_v31  ;;  %v2692_v41 = vunpack.i.h.bf16 %v4343_v17  ;;  %v2691_v15 = vunpack.i.l.bf16 %v4343_v17  ;;  %v4521_v56 = vpop.permute.xlu0 %2849 }
 0x23d   : > { %v702_v11 = vsel %vm462_vm8, %v701_v22, %v4948_v54  ;;  %v1146_v45 = vsel %vm462_vm8, %v1145_v24, %v4949_v23  ;;  %v2712_v36 = vunpack.i.h.bf16 %v4345_v58  ;;  %v2711_v33 = vunpack.i.l.bf16 %v4345_v58 }
 0x23e   : > { %v2697_v28 = vunpack.i.h.bf16 %v4347_v29  ;;  %v2696_v30 = vunpack.i.l.bf16 %v4347_v29  ;;  %v2717_v27 = vunpack.i.h.bf16 %v4349_v12  ;;  %v2716_v3 = vunpack.i.l.bf16 %v4349_v12 }
 0x23f   : > { %v2068_v31 = vsel %vm452_vm3, %v4053_v53, %v2772_v21  ;;  %v1616_v19 = vsel %vm452_vm3, %v4063_v0, %v2771_v40  ;;  %v2702_v4 = vunpack.i.h.bf16 %v4351_v61  ;;  %v2701_v1 = vunpack.i.l.bf16 %v4351_v61  ;;  %v2800_v25 = vpop.permute.xlu1 %2799 }
 0x240   : > { %v2707_v43 = vunpack.i.h.bf16 %v4355_v49  ;;  %v2706_v60 = vunpack.i.l.bf16 %v4355_v49  ;;  %v2727_v13 = vunpack.i.h.bf16 %v4363_v14  ;;  %v2726_v42 = vunpack.i.l.bf16 %v4363_v14  ;;  %v4539_v2 = vpop.permute.xlu0 %2854 }
 0x241   : > { %v2802_v10 = vunpack.i.h.bf16 %v2800_v25  ;;  %v2801_v20 = vunpack.i.l.bf16 %v2800_v25  ;;  %v2817_v53 = vunpack.i.h.bf16 %v4436_v63  ;;  %v2816_v0 = vunpack.i.l.bf16 %v4436_v63 }
 0x242   : > { %v1617_v61 = vsel %vm454_vm4, %v1616_v19, %v2651_v57  ;;  %v2069_v49 = vsel %vm454_vm4, %v2068_v31, %v2652_v38  ;;  %v2837_v21 = vunpack.i.h.bf16 %v4470_v46  ;;  %v2836_v52 = vunpack.i.l.bf16 %v4470_v46 }
 0x243   : > { %v1830_v40 = vsel %vm452_vm3, %v4195_v8, %v2802_v10  ;;  %v1386_v22 = vsel %vm452_vm3, %v4184_v35, %v2801_v20  ;;  %v2787_v24 = vunpack.i.h.bf16 %v2785_v55  ;;  %v2786_v63 = vunpack.i.l.bf16 %v2785_v55  ;;  %v2805_v54 = vpop.permute.xlu1 %2804 }
 0x244   : > { %v1831_v51 = vsel %vm454_vm4, %v1830_v40, %v2677_v18  ;;  %v1387_v57 = vsel %vm454_vm4, %v1386_v22, %v2676_v59  ;;  %v2807_v37 = vunpack.i.h.bf16 %v2805_v54  ;;  %v2806_v23 = vunpack.i.l.bf16 %v2805_v54  ;;  %v2870_v38 = vpop.permute.xlu0 %2869 }
 0x245   : > { %v1388_v31 = vsel %vm456_vm5, %v1387_v57, %v2836_v52  ;;  %v1832_v46 = vsel %vm456_vm5, %v1831_v51, %v2837_v21  ;;  %v2842_v19 = vunpack.i.h.bf16 %v4488_v62  ;;  %v2841_v8 = vunpack.i.l.bf16 %v4488_v62 }
 0x246   : > { %v4562_v35 = vsel %vm458_vm6, %v1388_v31, %v2701_v1  ;;  %v4565_v55 = vsel %vm458_vm6, %v1832_v46, %v2702_v4  ;;  %v1618_v18 = vsel %vm456_vm5, %v1617_v61, %v2806_v23  ;;  %v2070_v59 = vsel %vm456_vm5, %v2069_v49, %v2807_v37 }
 0x247   : > { %v703_v25 = vsel %vm464_vm9, %v702_v11, %v2816_v0  ;;  %v1147_v10 = vsel %vm464_vm9, %v1146_v45, %v2817_v53  ;;  %v2061_v20 = vsel %vm452_vm3, %v4165_v47, %v2787_v24  ;;  %v1609_v62 = vsel %vm452_vm3, %v4173_v5, %v2786_v63  ;;  %v2820_v4 = vpop.permute.xlu1 %2819 }
 0x248   : > { %v1619_v1 = vsel %vm458_vm6, %v1618_v18, %v2681_v50  ;;  %v2071_v21 = vsel %vm458_vm6, %v2070_v59, %v2682_v6  ;;  %v2822_v52 = vunpack.i.h.bf16 %v2820_v4  ;;  %v2821_v40 = vunpack.i.l.bf16 %v2820_v4  ;;  %v4577_v61 = vpop.permute.xlu0 %2874 }
 0x249   : > { %v1620_v49 = vsel %vm460_vm7, %v1619_v1, %v2841_v8  ;;  %v2072_v11 = vsel %vm460_vm7, %v2071_v21, %v2842_v19  ;;  %v2852_v45 = vunpack.i.h.bf16 %v4521_v56  ;;  %v2851_v47 = vunpack.i.l.bf16 %v4521_v56 }
 0x24a   : > { %v4584_v53 = vsel %vm462_vm8, %v1620_v49, %v2706_v60  ;;  %v4587_v5 = vsel %vm462_vm8, %v2072_v11, %v2707_v43  ;;  %v1823_v6 = vsel %vm452_vm3, %v4225_v7, %v2822_v52  ;;  %v1379_v50 = vsel %vm452_vm3, %v4214_v16, %v2821_v40 }
 0x24b   : > { %v1610_v0 = vsel %vm454_vm4, %v1609_v62, %v2666_v34  ;;  %v2062_v56 = vsel %vm454_vm4, %v2061_v20, %v2667_v32  ;;  %v2872_v22 = vunpack.i.h.bf16 %v2870_v38  ;;  %v2871_v60 = vunpack.i.l.bf16 %v2870_v38  ;;  %v2825_v24 = vpop.permute.xlu1 %2824 }
 0x24c   : > { %v1824_v43 = vsel %vm454_vm4, %v1823_v6, %v2692_v41  ;;  %v1380_v7 = vsel %vm454_vm4, %v1379_v50, %v2691_v15  ;;  %v2827_v34 = vunpack.i.h.bf16 %v2825_v24  ;;  %v2826_v51 = vunpack.i.l.bf16 %v2825_v24  ;;  %v4607_v26 = vpop.permute.xlu0 %2879 }
 0x24d   : > { %v1381_v16 = vsel %vm456_vm5, %v1380_v7, %v2851_v47  ;;  %v1825_v63 = vsel %vm456_vm5, %v1824_v43, %v2852_v45  ;;  %v2857_v32 = vunpack.i.h.bf16 %v4539_v2  ;;  %v2856_v57 = vunpack.i.l.bf16 %v4539_v2 }
 0x24e   : > { %v1382_v41 = vsel %vm458_vm6, %v1381_v16, %v2711_v33  ;;  %v1826_v17 = vsel %vm458_vm6, %v1825_v63, %v2712_v36  ;;  %v1611_v15 = vsel %vm456_vm5, %v1610_v0, %v2826_v51  ;;  %v2063_v54 = vsel %vm456_vm5, %v2062_v56, %v2827_v34 }
 0x24f   : > { %v1383_v37 = vsel %vm460_vm7, %v1382_v41, %v2871_v60  ;;  %v1827_v23 = vsel %vm460_vm7, %v1826_v17, %v2872_v22  ;;  %v1612_v2 = vsel %vm458_vm6, %v1611_v15, %v2696_v30  ;;  %v2064_v33 = vsel %vm458_vm6, %v2063_v54, %v2697_v28  ;;  %v2845_v38 = vpop.permute.xlu1 %2844 }
 0x250   : > { %v1384_v58 = vsel %vm462_vm8, %v1383_v37, %v2726_v42  ;;  %v1828_v36 = vsel %vm462_vm8, %v1827_v23, %v2727_v13  ;;  %v1613_v31 = vsel %vm460_vm7, %v1612_v2, %v2856_v57  ;;  %v2065_v46 = vsel %vm460_vm7, %v2064_v33, %v2857_v32  ;;  %v2265_v30 = vpop.permute.xlu0 %2264 }
 0x251   : > { %v2847_v19 = vunpack.i.h.bf16 %v2845_v38  ;;  %v2846_v8 = vunpack.i.l.bf16 %v2845_v38  ;;  %v2307_v18 = vrot.slane %v703_v25, 4  ;;  %v2313_v29 = vrot.slane %v1147_v10, 4  ;;  %v4952_v38 = vld [vmem:[#allocation17_spill] sm:$0xff] }
 0x252   : > { %v1614_v28 = vsel %vm462_vm8, %v1613_v31, %v2716_v3  ;;  %v2066_v42 = vsel %vm462_vm8, %v2065_v46, %v2717_v27  ;;  %v2722_v3 = vunpack.i.h.bf16 %v4359_v9  ;;  %v2721_v12 = vunpack.i.l.bf16 %v4359_v9 }
 0x253   : > { %v465_v14 = vsel %vm464_vm9, %v4496_v39, %v2846_v8  ;;  %v933_v13 = vsel %vm464_vm9, %v4507_v44, %v2847_v19  ;;  %v2860_v59 = vpop.permute.xlu1 %2859  ;;  %v2876_v27 = vunpack.i.l.bf16 %v4577_v61  ;;  %v2298_v39 = vsel %vm452_vm3, %v4257_v48, %v2265_v30  ;;  %v4953_v19 = vld [vmem:[#allocation10_spill] sm:$0xff] }
 0x254   : > { %v2330_v20 = vsel %vm2329_vm10, %v465_v14, %v2307_v18  ;;  %v2332_v25 = vsel %vm2329_vm10, %v933_v13, %v2313_v29  ;;  %v2862_v10 = vunpack.i.h.bf16 %v2860_v59  ;;  %v2861_v62 = vunpack.i.l.bf16 %v2860_v59  ;;  %v2273_v1 = vpop.permute.xlu0 %2272  ;;  %v4956_v59 = vld [vmem:[#allocation23_spill] sm:$0xff] }
 0x255   : > { %v2540_v21 = vpack.c.bf16 %v2332_v25, %v2330_v20  ;;  %v2877_v11 = vunpack.i.h.bf16 %v4577_v61  ;;  %v1615_v47 = vsel %vm464_vm9, %v1614_v28, %v2876_v27  ;;  %v2882_v48 = vunpack.i.h.bf16 %v4607_v26  ;;  %v4955_v28 = vld [vmem:[#allocation16_spill] sm:$0xff] }
 0x256   : > { %v1390_v44 = vsel %vm460_vm7, %v4562_v35, %v2861_v62  ;;  %v1834_v4 = vsel %vm460_vm7, %v4565_v55, %v2862_v10  ;;  %v2881_v6 = vunpack.i.l.bf16 %v4607_v26  ;;  %v4950_v35 = vld [vmem:[#allocation18_spill] sm:$0xff]  ;;  %v2319_v24 = vrot.slane %v1615_v47, 4  ;;  %v4951_v26 = vld [vmem:[#allocation9_spill] sm:$0xff] }
 0x257   : > { %2541 = vmatpush1.bf16.msra.mxu0 %v2540_v21  ;;  %v1391_v52 = vsel %vm462_vm8, %v1390_v44, %v2721_v12  ;;  %v1835_v40 = vsel %vm462_vm8, %v1834_v4, %v2722_v3  ;;  %v2865_v49 = vpop.permute.xlu1 %2864  ;;  %v2299_v50 = vsel %vm454_vm4, %v2298_v39, %v4950_v35  ;;  %v2067_v22 = vsel %vm464_vm9, %v2066_v42, %v2877_v11  ;;  %v2338_v10 = vld [vmem:[%s4750_s1] sm:$0xff] }
 0x258   : > { %v2867_v9 = vunpack.i.h.bf16 %v2865_v49  ;;  %v2866_v45 = vunpack.i.l.bf16 %v2865_v49  ;;  %v2281_v55 = vpop.permute.xlu0 %2280  ;;  %v2300_v0 = vsel %vm456_vm5, %v2299_v50, %v2273_v1  ;;  %v1392_v34 = vsel %vm464_vm9, %v1391_v52, %v2881_v6 }
 0x259   : > { %v1836_v51 = vsel %vm464_vm9, %v1835_v40, %v2882_v48  ;;  %v2301_v32 = vsel %vm458_vm6, %v2300_v0, %v4951_v26 }
 0x25a   : > { %v1622_v56 = vsel %vm464_vm9, %v4584_v53, %v2866_v45  ;;  %v2074_v61 = vsel %vm464_vm9, %v4587_v5, %v2867_v9  ;;  %v2325_v5 = vrot.slane %v2067_v22, 4  ;;  %v2302_v41 = vsel %vm460_vm7, %v2301_v32, %v2281_v55 }
 0x25b   : > { %v2320_v60 = vrot.slane %v1622_v56, 4  ;;  %v2326_v43 = vrot.slane %v2074_v61, 4  ;;  %v2885_v7 = vpop.permute.xlu1 %2884  ;;  %v2303_v8 = vsel %vm462_vm8, %v2302_v41, %v4953_v19 }
 0x25c   : > { %v2887_v16 = vunpack.i.h.bf16 %v2885_v7  ;;  %v2886_v63 = vunpack.i.l.bf16 %v2885_v7  ;;  %v2289_v37 = vpop.permute.xlu0 %2288 }
 0x25d   : > { %v2335_v53 = vsel %vm2329_vm10, %v1392_v34, %v2320_v60  ;;  %v2337_v57 = vsel %vm2329_vm10, %v1836_v51, %v2326_v43  ;;  %v2304_v30 = vsel %vm464_vm9, %v2303_v8, %v2289_v37 }
 0x25e   : > { %v1385_v17 = vsel %vm464_vm9, %v1384_v58, %v2886_v63  ;;  %v1829_v15 = vsel %vm464_vm9, %v1828_v36, %v2887_v16  ;;  %v2542_v54 = vpack.c.bf16 %v2337_v57, %v2335_v53  ;;  %v4954_v58 = vld [vmem:[#allocation15_spill] sm:$0xff] }
 0x25f   : > { %v2237_v23 = vpop.permute.xlu1 %2236  ;;  %v2334_v2 = vsel %vm2329_vm10, %v1385_v17, %v2319_v24  ;;  %v2336_v33 = vsel %vm2329_vm10, %v1829_v15, %v2325_v5 }
 0x260   : > { %v2291_v31 = vsel %vm452_vm3, %v4952_v38, %v2237_v23  ;;  %2543 = vmatprep.subr.bf16.mxu0 %v2542_v54  ;;  %v2544_v46 = vpack.c.bf16 %v2336_v33, %v2334_v2 }
 0x261   : > { %v2292_v36 = vsel %vm454_vm4, %v2291_v31, %v4954_v58 }
 0x262   : > { %2545 = vmatpush1.bf16.msra.mxu0 %v2544_v46 }
 0x263   : > { %v2245_v18 = vpop.permute.xlu1 %2244  ;;  %2528 = vmatprep.subr.msk.mxu0 %vm2329_vm10, %v2304_v30 }
 0x264   : > { %v2293_v29 = vsel %vm456_vm5, %v2292_v36, %v2245_v18 }
 0x265   : > { %v2294_v42 = vsel %vm458_vm6, %v2293_v29, %v4955_v28 }
 0x267   : > { %v2253_v14 = vpop.permute.xlu1 %2252 }
 0x268   : > { %v2295_v13 = vsel %vm460_vm7, %v2294_v42, %v2253_v14 }
 0x269   : > { %v2296_v20 = vsel %vm462_vm8, %v2295_v13, %v4956_v59 }
 0x26b   : > { %v2261_v25 = vpop.permute.xlu1 %2260 }
 0x26c   : > { %v2297_v62 = vsel %vm464_vm9, %v2296_v20, %v2261_v25 }
 0x26d   : > { %2529 = vmatpush1.msk.msra.mxu0 %vm2329_vm10, %v2297_v62  ;;  %v2343_v1 = vpop.permute.xlu0 %2342 }
 0x26e   : > { %2530 = vmatmul.mubr.msk.f32.vlgmr.msra.gmra.mrb[0].mxu0 %vm2345_vm11, %v2338_v10 }
 0x341   : > { %v2421_v21 = vpop.f32.mrb[0].mxu0 }
 0x342   : > { %v2422_v3 = vadd.f32 %v2421_v21, %v2343_v1  ;;  %v2423_v12 = vpop.f32.mrb[1].mxu0 }
 0x343   : > { %v2424_v27 = vadd.f32 %v2423_v12, %v2343_v1 }
 0x344   : > { %vm2426_vm12 = vcmp.ge.f32.partialorder %v2422_v3, 0.0  ;;  %v2428_v39 = vmul.f32 0.1, %v2422_v3 }
 0x345   : > { %vm2427_vm13 = vcmp.ge.f32.partialorder %v2424_v27, 0.0  ;;  %v2429_v44 = vmul.f32 0.1, %v2424_v27 }
 0x346   : > { %v2430_v4 = vsel %vm2426_vm12, %v2422_v3, %v2428_v39 }
 0x347   : > { %2432 = vst [vmem:[%s188_s11] sm:$0xff] %v2430_v4  ;;  %v2431_v52 = vsel %vm2427_vm13, %v2424_v27, %v2429_v44 }
 0x348   : > { %2433 = vst [vmem:[%s188_s11 + $0x8] sm:$0xff] %v2431_v52 }
 0x349   : > { %2956 = shalt.err (!%p2953_p2)
}
 0x34a   : > { %s2957_s5 = scalar_lea.hbm %s4705_s7, 256  ;;  %s2961_s27 = scalar_lea.hbm %s4752_s3, 512 }
 0x34b   : > { %p2958_p4 = scmp.ne.s32.totalorder %s4705_s7, %s2957_s5  ;;  %p2962_p9 = scmp.lt.u32.totalorder %s4705_s7, %s4752_s3 }
 0x34c   : > { %p2963_p1 = scmp.lt.u32.totalorder %s2961_s27, %s2957_s5  ;;  %p2965_p6 = scmp.lt.u32.totalorder %s2957_s5, %s4705_s7 }
 0x34d   : > { %p2959_p5 = pnand %p2958_p4, %p4957_p11 }
 0x34e   : > { %p2964_p3 = por %p2963_p1, %p2962_p9 }
 0x34f   : > { %p2960_p7 = pneg %p2959_p5 }
 0x350   : > { %p2966_p12 = por %p2965_p6, %p2964_p3 }
 0x352   : > { %p2967_p13 = pnand %p2966_p12, %p2960_p7 }
 0x354   : > { %2970 = shalt.err (!%p2967_p13)
}
 0x355   : > { %2548 = dma.vmem_to_hbm [thread:$0]  (%p4957_p11), %s4707_s23, 256, %s4705_s7, %s2435_s16  }
 0x356 PF: > { %s2461_s30 = sand.u32 1, %s2997_s12   ;;  %p4958_p8 = scmp.ne.s32.totalorder %s4807_s25, 0 }
 0x357   : > { %p4959_p10 = scmp.ge.s32.totalorder %s3009_s15, 2  ;;  %s2462_s9 = scalar_lea.sflag [#allocation5], %s2461_s30 }
 0x359   : > { %p2555_p0 = pnand %p4959_p10, %p4958_p8 }
 0x35b   : > { %2992 = dma.done.wait (!%p2555_p0), %s2462_s9, 256  }
 0x35c   : > { %2994 = vsyncadd (!%p2555_p0), %s2462_s9, 4294967040  ;;  %p16_p2 = scmp.ge.s32.totalorder %s3074_s18, 4   ;;  %s4960_s12 = smov %s3001_s13 }
 0x35d   : > { %s4961_s13 = smov %s3005_s14  ;;  %s4962_s14 = smov %s3086_s21 }
 0x35e   : > { %s4963_s15 = smov %s3074_s18  ;;  %18 = sbr.rel (!%p16_p2) target bundleno = 5 (0x5), region = 77 }
 0x365   :  { %2467 = vsyncpa [#allocation4], 1 }
 0x366   :  { %2469 = vsyncpa [#allocation4 + $0x1], 1 }
 0x367   :  { %2470 = vsyncpa [#allocation5], 1 }
 0x368   :  { %2472 = vsyncpa [#allocation5 + $0x1], 1 }

</bundles_post_ra>
